<compile_context>
chip_gen: v7x
topology: tpu7x:2x2x1
jax: 0.10.0
libtpu: 0.0.40
codegen_flags: <defaults>
</compile_context>

<pallas_src>
import functools

import jax
import jax.numpy as jnp
from jax.experimental import pallas as pl
from jax.experimental.pallas import tpu as pltpu


def _round_up(x, m):
    return (x + m - 1) // m * m


def _choose_tile_h(H, W, Cin, Cout_p, itemsize,
                   vmem_budget=24 * 1024 * 1024, acc_budget=64 * 1024):
    """Largest divisor of H whose per-step footprint fits the VMEM/acc budgets."""
    best = 1
    for t in range(1, H + 1):
        if H % t:
            continue
        acc_bytes = t * W * Cout_p * 4                       # f32 accumulator
        in_bytes = (t + 2) * (W + 2) * Cin * itemsize        # stitched input tile
        out_bytes = t * W * Cout_p * itemsize
        w_bytes = 9 * Cin * Cout_p * itemsize
        # 2x for double-buffered input/output blocks + scratch + weights + acc.
        total = 2 * (in_bytes + out_bytes) + in_bytes + acc_bytes + w_bytes
        if acc_bytes <= acc_budget and total <= vmem_budget:
            best = t
    return best


def _conv3x3_kernel(xm_ref, xh0_ref, xh1_ref, w_ref, b_ref, o_ref, xs_ref,
                    *, compute_dtype):
    # xm_ref : (1, TILE_H, W+2, Cin)   main rows of the padded input
    # xh0_ref: (1, 1, W+2, Cin)        halo row  TILE_H   below the slab
    # xh1_ref: (1, 1, W+2, Cin)        halo row  TILE_H+1 below the slab
    # w_ref  : (3, 3*Cin, Cout_p)      weights, dx folded into the K axis
    # b_ref  : (1, Cout_p)
    # o_ref  : (1, TILE_H, W, Cout_p)
    # xs_ref : (TILE_H+2, W+2, Cin)    VMEM scratch for the stitched tile
    tile_h = xm_ref.shape[1]
    cin = xm_ref.shape[3]
    w_out = o_ref.shape[2]
    cout_p = o_ref.shape[3]

    # Stitch main rows + 2-row bottom halo into one (TILE_H+2, W+2, Cin) tile.
    xs_ref[0:tile_h] = xm_ref[0]
    xs_ref[tile_h] = xh0_ref[0, 0]
    xs_ref[tile_h + 1] = xh1_ref[0, 0]

    acc = jnp.zeros((tile_h * w_out, cout_p), jnp.float32)
    for dy in range(3):
        rows = xs_ref[dy:dy + tile_h]                       # (TILE_H, W+2, Cin)
        # Concatenate the three dx-shifted windows on the channel axis:
        # one K = 3*Cin MXU matmul per dy (3 total instead of 9 K=Cin dots).
        tap = jnp.concatenate(
            [rows[:, dx:dx + w_out, :] for dx in range(3)], axis=-1)
        tap = tap.reshape(tile_h * w_out, 3 * cin)
        w_dy = w_ref[dy]                                    # (3*Cin, Cout_p)
        if compute_dtype is not None:
            tap = tap.astype(compute_dtype)
            w_dy = w_dy.astype(compute_dtype)
        acc = acc + jnp.dot(tap, w_dy, preferred_element_type=jnp.float32)

    acc = acc + b_ref[...].astype(jnp.float32)              # (1, Cout_p) bcast
    o_ref[0] = acc.reshape(tile_h, w_out, cout_p).astype(o_ref.dtype)


def conv3x3(x_nchw, weight, bias, *, use_refl=True, tile_h=None,
            compute_dtype=None):
    """x_nchw: (N, Cin, H, W); weight: (Cout, Cin, 3, 3); bias: (Cout,)."""
    N, Cin, H, W = x_nchw.shape
    Cout = weight.shape[0]
    Cout_p = _round_up(Cout, 128)       # lane-dense output stores

    # --- wrapper glue (plain JAX): layout + padding -------------------------
    x = jnp.transpose(x_nchw, (0, 2, 3, 1))                 # NCHW -> NHWC
    pad_mode = "reflect" if use_refl else "constant"
    x_pad = jnp.pad(x, ((0, 0), (1, 1), (1, 1), (0, 0)), mode=pad_mode)

    # Weights: (Cout, Cin, 3, 3) -> (3, 3, Cin, Cout_p) -> (3, 3*Cin, Cout_p)
    w = jnp.transpose(weight, (2, 3, 1, 0))
    w = jnp.pad(w, ((0, 0), (0, 0), (0, 0), (0, Cout_p - Cout)))
    w = w.reshape(3, 3 * Cin, Cout_p)
    b = jnp.pad(bias, (0, Cout_p - Cout)).reshape(1, Cout_p).astype(jnp.float32)

    # --- tiling -------------------------------------------------------------
    if tile_h is None:
        tile_h = _choose_tile_h(H, W, Cin, Cout_p, x.dtype.itemsize)
    assert H % tile_h == 0, "tile_h must divide H"
    n_h = H // tile_h

    kernel = functools.partial(_conv3x3_kernel, compute_dtype=compute_dtype)

    out_nhwc = pl.pallas_call(
        kernel,
        out_shape=jax.ShapeDtypeStruct((N, H, W, Cout_p), x.dtype),
        grid_spec=pltpu.PrefetchScalarGridSpec(
            num_scalar_prefetch=0,
            grid=(N, n_h),
            in_specs=[
                # main TILE_H rows of the padded input
                pl.BlockSpec((1, tile_h, W + 2, Cin),
                             lambda n, h: (n, h, 0, 0)),
                # two 1-row bottom-halo blocks (row-block size 1 => block index
                # equals padded-row index; always in-bounds since the array has
                # H+2 rows)
                pl.BlockSpec((1, 1, W + 2, Cin),
                             lambda n, h: (n, (h + 1) * tile_h, 0, 0)),
                pl.BlockSpec((1, 1, W + 2, Cin),
                             lambda n, h: (n, (h + 1) * tile_h + 1, 0, 0)),
                # weights / bias stay resident across the grid
                pl.BlockSpec((3, 3 * Cin, Cout_p), lambda n, h: (0, 0, 0)),
                pl.BlockSpec((1, Cout_p), lambda n, h: (0, 0)),
            ],
            out_specs=pl.BlockSpec((1, tile_h, W, Cout_p),
                                   lambda n, h: (n, h, 0, 0)),
            scratch_shapes=[
                pltpu.VMEM((tile_h + 2, W + 2, Cin), x.dtype),
            ],
        ),
        compiler_params=pltpu.CompilerParams(
            dimension_semantics=("parallel", "parallel"),
            vmem_limit_bytes=32 * 1024 * 1024,
        ),
    )(x_pad, x_pad, x_pad, w, b)

    # Drop channel padding, NHWC -> NCHW (module contract); XLA fuses these.
    return jnp.transpose(out_nhwc[..., :Cout], (0, 3, 1, 2))


if __name__ == "__main__":
    key = jax.random.PRNGKey(0)
    k_x, k_w, k_b = jax.random.split(key, 3)

    N, Cin, H, W = 2, 4, 16, 16
    Cout = 8

    x = jax.random.normal(k_x, (N, Cin, H, W), dtype=jnp.float32)
    fan_in = Cin * 3 * 3
    bound = 1.0 / (fan_in ** 0.5)
    weight = jax.random.uniform(k_w, (Cout, Cin, 3, 3), jnp.float32,
                                minval=-bound, maxval=bound)
    bias = jax.random.uniform(k_b, (Cout,), jnp.float32,
                              minval=-bound, maxval=bound)

    # Reflection-pad path (module default).
    out_refl = jax.block_until_ready(conv3x3(x, weight, bias, use_refl=True))
    x_pad_ref = jnp.pad(x, ((0, 0), (0, 0), (1, 1), (1, 1)), mode="reflect")
    ref_refl = jax.lax.conv_general_dilated(
        x_pad_ref, weight, window_strides=(1, 1), padding="VALID",
        dimension_numbers=("NCHW", "OIHW", "NCHW"),
    ) + bias.reshape(1, Cout, 1, 1)
    assert out_refl.shape == (N, Cout, H, W)
    assert jnp.allclose(out_refl, ref_refl, atol=1e-4, rtol=1e-4)

    # Zero-pad path (use_refl=False).
    out_zero = jax.block_until_ready(conv3x3(x, weight, bias, use_refl=False))
    ref_zero = jax.lax.conv_general_dilated(
        x, weight, window_strides=(1, 1), padding=((1, 1), (1, 1)),
        dimension_numbers=("NCHW", "OIHW", "NCHW"),
    ) + bias.reshape(1, Cout, 1, 1)
    assert out_zero.shape == (N, Cout, H, W)
    assert jnp.allclose(out_zero, ref_zero, atol=1e-4, rtol=1e-4)

    print("KERNEL_OK")
</pallas_src>

<mosaic_0001>
module attributes {stable_mosaic.version = 11 : i64} {
  func.func @_conv3x3_kernel(%arg0: i32, %arg1: i32, %arg2: memref<1x8x18x4xf32, #tpu.memory_space<vmem>>, %arg3: memref<1x1x18x4xf32, #tpu.memory_space<vmem>>, %arg4: memref<1x1x18x4xf32, #tpu.memory_space<vmem>>, %arg5: memref<3x12x128xf32, #tpu.memory_space<vmem>>, %arg6: memref<1x128xf32, #tpu.memory_space<vmem>>, %arg7: memref<1x8x16x128xf32, #tpu.memory_space<vmem>>, %arg8: memref<10x18x4xf32, #tpu.memory_space<vmem>>) attributes {dimension_semantics = [#tpu.dimension_semantics<parallel>, #tpu.dimension_semantics<parallel>], iteration_bounds = array<i64: 2, 2>, scalar_prefetch = 0 : i64, scratch_operands = 1 : i64, tpu.core_type = #tpu.core_type<tc>, window_params = [{transform_indices = @transform_0, window_bounds = array<i64: 1, 8, 18, 4>}, {transform_indices = @transform_1, window_bounds = array<i64: 1, 1, 18, 4>}, {transform_indices = @transform_2, window_bounds = array<i64: 1, 1, 18, 4>}, {pipeline_mode = #tpu.pipeline_mode<synchronous>, transform_indices = @transform_3, window_bounds = array<i64: 3, 12, 128>}, {pipeline_mode = #tpu.pipeline_mode<synchronous>, transform_indices = @transform_4, window_bounds = array<i64: 1, 128>}, {transform_indices = @transform_5, window_bounds = array<i64: 1, 8, 16, 128>}]} {
    %c0 = arith.constant 0 : index
    %c0_0 = arith.constant 0 : index
    %c0_1 = arith.constant 0 : index
    %c0_2 = arith.constant 0 : index
    %0 = vector.load %arg2[%c0, %c0_0, %c0_1, %c0_2] : memref<1x8x18x4xf32, #tpu.memory_space<vmem>>, vector<1x8x18x4xf32>
    %1 = vector.shape_cast %0 : vector<1x8x18x4xf32> to vector<8x18x4xf32>
    %c0_3 = arith.constant 0 : index
    %c0_4 = arith.constant 0 : index
    %c0_5 = arith.constant 0 : index
    %2 = vector.load %arg8[%c0_3, %c0_4, %c0_5] : memref<10x18x4xf32, #tpu.memory_space<vmem>>, vector<8x18x4xf32>
    tpu.vector_store %arg8[%c0_3, %c0_4, %c0_5], %1 {strides = array<i32>} : memref<10x18x4xf32, #tpu.memory_space<vmem>>, vector<8x18x4xf32>,
    %c0_6 = arith.constant 0 : index
    %c0_7 = arith.constant 0 : index
    %c0_8 = arith.constant 0 : index
    %c0_9 = arith.constant 0 : index
    %3 = vector.load %arg3[%c0_6, %c0_7, %c0_8, %c0_9] : memref<1x1x18x4xf32, #tpu.memory_space<vmem>>, vector<1x1x18x4xf32>
    %4 = vector.shape_cast %3 : vector<1x1x18x4xf32> to vector<18x4xf32>
    %c8 = arith.constant 8 : index
    %c0_10 = arith.constant 0 : index
    %c0_11 = arith.constant 0 : index
    %5 = vector.load %arg8[%c8, %c0_10, %c0_11] : memref<10x18x4xf32, #tpu.memory_space<vmem>>, vector<1x18x4xf32>
    %6 = vector.shape_cast %5 : vector<1x18x4xf32> to vector<18x4xf32>
    %7 = vector.shape_cast %4 : vector<18x4xf32> to vector<1x18x4xf32>
    tpu.vector_store %arg8[%c8, %c0_10, %c0_11], %7 {strides = array<i32>} : memref<10x18x4xf32, #tpu.memory_space<vmem>>, vector<1x18x4xf32>,
    %c0_12 = arith.constant 0 : index
    %c0_13 = arith.constant 0 : index
    %c0_14 = arith.constant 0 : index
    %c0_15 = arith.constant 0 : index
    %8 = vector.load %arg4[%c0_12, %c0_13, %c0_14, %c0_15] : memref<1x1x18x4xf32, #tpu.memory_space<vmem>>, vector<1x1x18x4xf32>
    %9 = vector.shape_cast %8 : vector<1x1x18x4xf32> to vector<18x4xf32>
    %c9 = arith.constant 9 : index
    %c0_16 = arith.constant 0 : index
    %c0_17 = arith.constant 0 : index
    %10 = vector.load %arg8[%c9, %c0_16, %c0_17] : memref<10x18x4xf32, #tpu.memory_space<vmem>>, vector<1x18x4xf32>
    %11 = vector.shape_cast %10 : vector<1x18x4xf32> to vector<18x4xf32>
    %12 = vector.shape_cast %9 : vector<18x4xf32> to vector<1x18x4xf32>
    tpu.vector_store %arg8[%c9, %c0_16, %c0_17], %12 {strides = array<i32>} : memref<10x18x4xf32, #tpu.memory_space<vmem>>, vector<1x18x4xf32>,
    %cst = arith.constant 0.000000e+00 : f32
    %13 = vector.broadcast %cst : f32 to vector<128x128xf32>
    %c0_18 = arith.constant 0 : index
    %c0_19 = arith.constant 0 : index
    %c0_20 = arith.constant 0 : index
    %14 = vector.load %arg8[%c0_18, %c0_19, %c0_20] : memref<10x18x4xf32, #tpu.memory_space<vmem>>, vector<8x18x4xf32>
    %15 = vector.extract_strided_slice %14 {offsets = [0, 0, 0], sizes = [8, 16, 4], strides = [1, 1, 1]} : vector<8x18x4xf32> to vector<8x16x4xf32>
    %16 = vector.extract_strided_slice %14 {offsets = [0, 1, 0], sizes = [8, 16, 4], strides = [1, 1, 1]} : vector<8x18x4xf32> to vector<8x16x4xf32>
    %17 = vector.extract_strided_slice %14 {offsets = [0, 2, 0], sizes = [8, 16, 4], strides = [1, 1, 1]} : vector<8x18x4xf32> to vector<8x16x4xf32>
    %18 = tpu.concatenate %15, %16, %17 in 2 : vector<8x16x4xf32>, vector<8x16x4xf32>, vector<8x16x4xf32> -> vector<8x16x12xf32>
    %19 = vector.shape_cast %18 : vector<8x16x12xf32> to vector<128x12xf32>
    %c0_21 = arith.constant 0 : index
    %c0_22 = arith.constant 0 : index
    %c0_23 = arith.constant 0 : index
    %20 = vector.load %arg5[%c0_21, %c0_22, %c0_23] : memref<3x12x128xf32, #tpu.memory_space<vmem>>, vector<1x12x128xf32>
    %21 = vector.shape_cast %20 : vector<1x12x128xf32> to vector<12x128xf32>
    %cst_24 = arith.constant dense<0.000000e+00> : vector<128x128xf32>
    %22 = tpu.matmul %19, %21, %cst_24 {dimension_numbers = #tpu.dot_dimension_numbers<[1], [0], [0], [1], [0, 0, 1, 1], [], []>} : vector<128x12xf32>, vector<12x128xf32>, vector<128x128xf32> -> vector<128x128xf32>
    %23 = arith.addf %13, %22 : vector<128x128xf32>
    %c1 = arith.constant 1 : index
    %c0_25 = arith.constant 0 : index
    %c0_26 = arith.constant 0 : index
    %24 = vector.load %arg8[%c1, %c0_25, %c0_26] : memref<10x18x4xf32, #tpu.memory_space<vmem>>, vector<8x18x4xf32>
    %25 = vector.extract_strided_slice %24 {offsets = [0, 0, 0], sizes = [8, 16, 4], strides = [1, 1, 1]} : vector<8x18x4xf32> to vector<8x16x4xf32>
    %26 = vector.extract_strided_slice %24 {offsets = [0, 1, 0], sizes = [8, 16, 4], strides = [1, 1, 1]} : vector<8x18x4xf32> to vector<8x16x4xf32>
    %27 = vector.extract_strided_slice %24 {offsets = [0, 2, 0], sizes = [8, 16, 4], strides = [1, 1, 1]} : vector<8x18x4xf32> to vector<8x16x4xf32>
    %28 = tpu.concatenate %25, %26, %27 in 2 : vector<8x16x4xf32>, vector<8x16x4xf32>, vector<8x16x4xf32> -> vector<8x16x12xf32>
    %29 = vector.shape_cast %28 : vector<8x16x12xf32> to vector<128x12xf32>
    %c1_27 = arith.constant 1 : index
    %c0_28 = arith.constant 0 : index
    %c0_29 = arith.constant 0 : index
    %30 = vector.load %arg5[%c1_27, %c0_28, %c0_29] : memref<3x12x128xf32, #tpu.memory_space<vmem>>, vector<1x12x128xf32>
    %31 = vector.shape_cast %30 : vector<1x12x128xf32> to vector<12x128xf32>
    %cst_30 = arith.constant dense<0.000000e+00> : vector<128x128xf32>
    %32 = tpu.matmul %29, %31, %cst_30 {dimension_numbers = #tpu.dot_dimension_numbers<[1], [0], [0], [1], [0, 0, 1, 1], [], []>} : vector<128x12xf32>, vector<12x128xf32>, vector<128x128xf32> -> vector<128x128xf32>
    %33 = arith.addf %23, %32 : vector<128x128xf32>
    %c2 = arith.constant 2 : index
    %c0_31 = arith.constant 0 : index
    %c0_32 = arith.constant 0 : index
    %34 = vector.load %arg8[%c2, %c0_31, %c0_32] : memref<10x18x4xf32, #tpu.memory_space<vmem>>, vector<8x18x4xf32>
    %35 = vector.extract_strided_slice %34 {offsets = [0, 0, 0], sizes = [8, 16, 4], strides = [1, 1, 1]} : vector<8x18x4xf32> to vector<8x16x4xf32>
    %36 = vector.extract_strided_slice %34 {offsets = [0, 1, 0], sizes = [8, 16, 4], strides = [1, 1, 1]} : vector<8x18x4xf32> to vector<8x16x4xf32>
    %37 = vector.extract_strided_slice %34 {offsets = [0, 2, 0], sizes = [8, 16, 4], strides = [1, 1, 1]} : vector<8x18x4xf32> to vector<8x16x4xf32>
    %38 = tpu.concatenate %35, %36, %37 in 2 : vector<8x16x4xf32>, vector<8x16x4xf32>, vector<8x16x4xf32> -> vector<8x16x12xf32>
    %39 = vector.shape_cast %38 : vector<8x16x12xf32> to vector<128x12xf32>
    %c2_33 = arith.constant 2 : index
    %c0_34 = arith.constant 0 : index
    %c0_35 = arith.constant 0 : index
    %40 = vector.load %arg5[%c2_33, %c0_34, %c0_35] : memref<3x12x128xf32, #tpu.memory_space<vmem>>, vector<1x12x128xf32>
    %41 = vector.shape_cast %40 : vector<1x12x128xf32> to vector<12x128xf32>
    %cst_36 = arith.constant dense<0.000000e+00> : vector<128x128xf32>
    %42 = tpu.matmul %39, %41, %cst_36 {dimension_numbers = #tpu.dot_dimension_numbers<[1], [0], [0], [1], [0, 0, 1, 1], [], []>} : vector<128x12xf32>, vector<12x128xf32>, vector<128x128xf32> -> vector<128x128xf32>
    %43 = arith.addf %33, %42 : vector<128x128xf32>
    %c0_37 = arith.constant 0 : index
    %c0_38 = arith.constant 0 : index
    %44 = vector.load %arg6[%c0_37, %c0_38] : memref<1x128xf32, #tpu.memory_space<vmem>>, vector<1x128xf32>
    %45 = vector.broadcast %44 : vector<1x128xf32> to vector<128x128xf32>
    %46 = arith.addf %43, %45 : vector<128x128xf32>
    %47 = vector.shape_cast %46 : vector<128x128xf32> to vector<8x16x128xf32>
    %c0_39 = arith.constant 0 : index
    %c0_40 = arith.constant 0 : index
    %c0_41 = arith.constant 0 : index
    %c0_42 = arith.constant 0 : index
    %48 = vector.load %arg7[%c0_39, %c0_40, %c0_41, %c0_42] : memref<1x8x16x128xf32, #tpu.memory_space<vmem>>, vector<1x8x16x128xf32>
    %49 = vector.shape_cast %48 : vector<1x8x16x128xf32> to vector<8x16x128xf32>
    %50 = vector.shape_cast %47 : vector<8x16x128xf32> to vector<1x8x16x128xf32>
    tpu.vector_store %arg7[%c0_39, %c0_40, %c0_41, %c0_42], %50 {strides = array<i32>} : memref<1x8x16x128xf32, #tpu.memory_space<vmem>>, vector<1x8x16x128xf32>,
    return
  }
  func.func @transform_0(%arg0: i32, %arg1: i32) -> (i32, i32, i32, i32) {
    %c0_i32 = arith.constant 0 : i32
    %c0_i32_0 = arith.constant 0 : i32
    %c0_i32_1 = arith.constant 0 : i32
    return %arg0, %arg1, %c0_i32, %c0_i32_0 : i32, i32, i32, i32
  }
  func.func @transform_1(%arg0: i32, %arg1: i32) -> (i32, i32, i32, i32) {
    %c1_i32 = arith.constant 1 : i32
    %0 = arith.addi %arg1, %c1_i32 : i32
    %c8_i32 = arith.constant 8 : i32
    %1 = arith.muli %0, %c8_i32 : i32
    %c0_i32 = arith.constant 0 : i32
    %c0_i32_0 = arith.constant 0 : i32
    %c0_i32_1 = arith.constant 0 : i32
    return %arg0, %1, %c0_i32, %c0_i32_0 : i32, i32, i32, i32
  }
  func.func @transform_2(%arg0: i32, %arg1: i32) -> (i32, i32, i32, i32) {
    %c1_i32 = arith.constant 1 : i32
    %0 = arith.addi %arg1, %c1_i32 : i32
    %c8_i32 = arith.constant 8 : i32
    %1 = arith.muli %0, %c8_i32 : i32
    %c1_i32_0 = arith.constant 1 : i32
    %2 = arith.addi %1, %c1_i32_0 : i32
    %c0_i32 = arith.constant 0 : i32
    %c0_i32_1 = arith.constant 0 : i32
    %c0_i32_2 = arith.constant 0 : i32
    return %arg0, %2, %c0_i32, %c0_i32_1 : i32, i32, i32, i32
  }
  func.func @transform_3(%arg0: i32, %arg1: i32) -> (i32, i32, i32) {
    %c0_i32 = arith.constant 0 : i32
    %c0_i32_0 = arith.constant 0 : i32
    %c0_i32_1 = arith.constant 0 : i32
    %c0_i32_2 = arith.constant 0 : i32
    return %c0_i32, %c0_i32_0, %c0_i32_1 : i32, i32, i32
  }
  func.func @transform_4(%arg0: i32, %arg1: i32) -> (i32, i32) {
    %c0_i32 = arith.constant 0 : i32
    %c0_i32_0 = arith.constant 0 : i32
    %c0_i32_1 = arith.constant 0 : i32
    return %c0_i32, %c0_i32_0 : i32, i32
  }
  func.func @transform_5(%arg0: i32, %arg1: i32) -> (i32, i32, i32, i32) {
    %c0_i32 = arith.constant 0 : i32
    %c0_i32_0 = arith.constant 0 : i32
    %c0_i32_1 = arith.constant 0 : i32
    return %arg0, %arg1, %c0_i32, %c0_i32_0 : i32, i32, i32, i32
  }
}

</mosaic_0001>

<bundles_post_ra>
// kernel: tpu_custom_call.1
= control target key start
LH: loop header
LB: loop body
LE: loop exit
PB: predicated region body
PF: predicated region fallthrough
CT: control target
= control target key end

     0   :  { %10 = vsyncpa [#allocation4], 0  ;;  %s3430_s0 = inlined_call_operand.vmem [shape: f32[2,18,18,4], index: 0, kind: input, shape index: {}]   ;;  %s3431_s1 = inlined_call_operand.vmem [shape: f32[2,18,18,4], index: 1, kind: input, shape index: {}]   ;;  %s3432_s2 = inlined_call_operand.vmem [shape: f32[2,18,18,4], index: 2, kind: input, shape index: {}]   ;;  %s3433_s3 = inlined_call_operand.vmem [shape: f32[3,12,128], index: 3, kind: input, shape index: {}]   ;;  %s3434_s4 = inlined_call_operand.vmem [shape: f32[1,128], index: 4, kind: input, shape index: {}]   ;;  %s3435_s5 = inlined_call_operand.hbm [shape: f32[2,16,16,128], index: 5, kind: output, shape index: {}]  }
   0x1   :  { %12 = vsyncpa [#allocation4 + $0x1], 0  ;;  %s2511_s18 = smov 0   ;;  %s2513_s19 = smov 0  }
   0x2   :  { %s2515_s20 = smov 0   ;;  %s2517_s21 = smov 0  }
   0x3   :  { %s2519_s22 = smov 0   ;;  %s2521_s23 = smov 0  }
   0x4   :  { %s2523_s24 = smov 0   ;;  %s2525_s25 = smov 0  }
   0x5 LB: > { %s2019_s26 = sadd.s32 4294967295, %s2474_s25   ;;  %s2020_s27 = sadd.s32 4294967294, %s2474_s25   ;;  %s2474_s25 = sphi %s2525_s25, %s18_s25   ;;  %s2470_s24 = sphi %s2523_s24, %s3446_s24   ;;  %s2466_s23 = sphi %s2521_s23, %s3445_s23   ;;  %s2462_s22 = sphi %s2519_s22, %s3444_s22   ;;  %s2458_s21 = sphi %s2517_s21, %s3443_s21   ;;  %s2454_s20 = sphi %s2515_s20, %s3442_s20   ;;  %s2450_s19 = sphi %s2513_s19, %s3441_s19   ;;  %s2446_s18 = sphi %s2511_s18, %s3440_s18  }
   0x6   : > { %s27_s28 = sadd.s32 1, %s2466_s23  ;;  %s30_s29 = sadd.s32 1, %s2470_s24 }
   0x7   : > { %p28_p0 = scmp.ge.s32.totalorder %s27_s28, 2  ;;  %p185_p1 = scmp.ne.s32.totalorder %s2454_s20, %s2450_s19 }
   0x8   : > { %p186_p2 = scmp.eq.s32.totalorder %s2019_s26, 3  ;;  %p191_p5 = scmp.ne.s32.totalorder %s2450_s19, %s2446_s18 }
   0x9   : > { %s3448_s28 = smov (%p28_p0, %s27_s28), 0  ;;  %s3450_s29 = smov (!%p28_p0, %s30_s29), %s2470_s24 }
   0xa   : > { %s171_s30 = ssub.s32 %s2466_s23, %s3448_s28  ;;  %p2562_p3 = por %p186_p2, %p185_p1 }
   0xb   : > { %p32_p4 = scmp.ge.s32.totalorder %s3450_s29, 2  ;;  %p192_p6 = scmp.eq.s32.totalorder %s2020_s27, 3 }
   0xc   : > { %p2027_p7 = scmp.ge.s32.totalorder %s2474_s25, 1  ;;  %p274_p9 = scmp.lt.s32.totalorder %s2474_s25, 5 }
   0xd   : > { %s3452_s29 = smov (%p32_p4, %s3450_s29), 0  ;;  %p2571_p8 = por %p192_p6, %p191_p5 }
   0xe   : > { %s170_s8 = ssub.s32 %s2470_s24, %s3452_s29  ;;  %s175_s9 = sadd.s32 1, %s2454_s20 }
   0xf   : > { %s172_s10 = sor.u32 %s171_s30, %s170_s8  ;;  %p275_p10 = pnand %p2027_p7, %p274_p9 }
  0x10   : > { %p173_p11 = scmp.eq.s32.totalorder %s172_s10, 0  ;;  %s2029_s12 = sshll.u32 (!%p275_p10), %s2458_s21, 3  ;;  %vm409_vm0 = vcmask (!%p275_p10), 31744   ;;  %vm412_vm1 = vcmask (!%p275_p10), 25600   ;;  %vm497_vm2 = vcmask (!%p275_p10), 1046528   ;;  %vm586_vm3 = vcmask (!%p275_p10), 1045504  }
  0x11   : > { %278 = sbr.rel (%p275_p10) target bundleno = 584 (0x248), region = 40  ;;  %p341_p12 = scmp.lt.s32.totalorder (!%p275_p10), %s2462_s22, 1  ;;  %vm1019_vm4 = vcmask (!%p275_p10), 1043456   ;;  %vm2478_vm5 = vmmov (!%p275_p10), 1   ;;  %vm691_vm7 = vcmask (!%p275_p10), 64512   ;;  %vm970_vm8 = vcmask (!%p275_p10), 97280  }
  0x12   : > { %s2580_s11 = scalar_select %p173_p11, %s2454_s20, %s175_s9  }
  0x13   : > { %p343_p13 = scmp.lt.s32.totalorder (!%p275_p10), %s2029_s12, 17  ;;  %s2587_s17 = sadd.s32 (!%p275_p10), 8, %s2029_s12  ;;  %vm2735_vm6 = vmpackc.low (!%p275_p10), %vm1019_vm4, %vm2478_vm5 }
  0x14   : > { %p360_p0 = scmp.lt.s32.totalorder (!%p275_p10), %s2587_s17, 17 }
  0x18   : > { %s342_s13 = scalar_select %p341_p12, %s2462_s22, 1 }
  0x19   : > { %s344_s14 = scalar_select %p343_p13, %s2029_s12, 17 }
  0x1a   : > { %s2585_s15 = smul.u32 54, %s342_s13 }
  0x1b   : > { %s2301_s16 = smul.u32 3, %s344_s14  ;;  %s2476_s14 = smov 4  }
  0x1c   : > { %s2614_s10 = scalar_select %p360_p0, %s2587_s17, 17 }
  0x1d   : > { %s347_s26 = sadd.s32 %s2585_s15, %s2301_s16 }
  0x1e   : > { %s2030_s27 = sshll.u32 %s347_s26, 3  ;;  %s2303_s12 = smul.u32 3, %s2614_s10 }
  0x1f   : > { %s2594_s9 = scalar_lea.vmem %s3430_s0, %s2030_s27  ;;  %s2477_s26 = smov 8  }
  0x20   : > { %v386_v0 = vld [vmem:[%s2594_s9 + $0x8] sm:$0xff]  ;;  %v387_v1 = vld [vmem:[%s2594_s9 + $0x10] sm:$0x3]  ;;  %v385_v2 = vld [vmem:[%s2594_s9] sm:$0xff]  ;;  %s364_s13 = sadd.s32 %s2303_s12, %s2585_s15 }
  0x21   : > { %411 = vst.msk [vmem:[#allocation2 + $0x8] sm:$0xff] %vm409_vm0, %v386_v0  ;;  %410 = vst.msk [vmem:[#allocation2] sm:$0xff] %vm409_vm0, %v385_v2  ;;  %v388_v3 = vld [vmem:[%s2594_s9 + $0x18] sm:$0xff]  ;;  %v389_v4 = vld [vmem:[%s2594_s9 + $0x20] sm:$0xff]  ;;  %s2032_s16 = sshll.u32 %s364_s13, 3 }
  0x22   : > { %413 = vst.msk [vmem:[#allocation2 + $0x10] sm:$0x3] %vm412_vm1, %v387_v1  ;;  %v390_v5 = vld [vmem:[%s2594_s9 + $0x28] sm:$0x3]  ;;  %v391_v6 = vld [vmem:[%s2594_s9 + $0x30] sm:$0xff]  ;;  %v392_v7 = vld [vmem:[%s2594_s9 + $0x38] sm:$0xff]  ;;  %s366_s8 = scalar_lea.vmem %s3431_s1, %s2032_s16 }
  0x23   : > { %414 = vst.msk [vmem:[#allocation2 + $0x18] sm:$0xff] %vm409_vm0, %v388_v3  ;;  %415 = vst.msk [vmem:[#allocation2 + $0x20] sm:$0xff] %vm409_vm0, %v389_v4  ;;  %v393_v8 = vld [vmem:[%s2594_s9 + $0x40] sm:$0x3]  ;;  %v394_v9 = vld [vmem:[%s2594_s9 + $0x48] sm:$0xff]  ;;  %s2110_s16 = sshll.u32 %s2458_s21, 4 }
  0x24   : > { %416 = vst.msk [vmem:[#allocation2 + $0x28] sm:$0x3] %vm412_vm1, %v390_v5  ;;  %419 = vst.msk [vmem:[#allocation2 + $0x40] sm:$0x3] %vm412_vm1, %v393_v8  ;;  %v395_v10 = vld [vmem:[%s2594_s9 + $0x50] sm:$0xff]  ;;  %v397_v12 = vld [vmem:[%s2594_s9 + $0x60] sm:$0xff] }
  0x25   : > { %417 = vst.msk [vmem:[#allocation2 + $0x30] sm:$0xff] %vm409_vm0, %v391_v6  ;;  %418 = vst.msk [vmem:[#allocation2 + $0x38] sm:$0xff] %vm409_vm0, %v392_v7  ;;  %v396_v11 = vld [vmem:[%s2594_s9 + $0x58] sm:$0x3]  ;;  %v398_v13 = vld [vmem:[%s2594_s9 + $0x68] sm:$0xff] }
  0x26   : > { %420 = vst.msk [vmem:[#allocation2 + $0x48] sm:$0xff] %vm409_vm0, %v394_v9  ;;  %421 = vst.msk [vmem:[#allocation2 + $0x50] sm:$0xff] %vm409_vm0, %v395_v10  ;;  %v399_v14 = vld [vmem:[%s2594_s9 + $0x70] sm:$0x3]  ;;  %v400_v15 = vld [vmem:[%s2594_s9 + $0x78] sm:$0xff] }
  0x27   : > { %422 = vst.msk [vmem:[#allocation2 + $0x58] sm:$0x3] %vm412_vm1, %v396_v11  ;;  %425 = vst.msk [vmem:[#allocation2 + $0x70] sm:$0x3] %vm412_vm1, %v399_v14  ;;  %v401_v16 = vld [vmem:[%s2594_s9 + $0x80] sm:$0xff]  ;;  %v403_v18 = vld [vmem:[%s2594_s9 + $0x90] sm:$0xff] }
  0x28   : > { %423 = vst.msk [vmem:[#allocation2 + $0x60] sm:$0xff] %vm409_vm0, %v397_v12  ;;  %424 = vst.msk [vmem:[#allocation2 + $0x68] sm:$0xff] %vm409_vm0, %v398_v13  ;;  %v402_v17 = vld [vmem:[%s2594_s9 + $0x88] sm:$0x3]  ;;  %v404_v19 = vld [vmem:[%s2594_s9 + $0x98] sm:$0xff] }
  0x29   : > { %426 = vst.msk [vmem:[#allocation2 + $0x78] sm:$0xff] %vm409_vm0, %v400_v15  ;;  %427 = vst.msk [vmem:[#allocation2 + $0x80] sm:$0xff] %vm409_vm0, %v401_v16  ;;  %v405_v20 = vld [vmem:[%s2594_s9 + $0xa0] sm:$0x3]  ;;  %v406_v21 = vld [vmem:[%s2594_s9 + $0xa8] sm:$0xff] }
  0x2a   : > { %428 = vst.msk [vmem:[#allocation2 + $0x88] sm:$0x3] %vm412_vm1, %v402_v17  ;;  %431 = vst.msk [vmem:[#allocation2 + $0xa0] sm:$0x3] %vm412_vm1, %v405_v20  ;;  %v407_v22 = vld [vmem:[%s2594_s9 + $0xb0] sm:$0xff]  ;;  %v2647_v24 = vld [vmem:[#allocation2 + $0x8] sm:$0xff] }
  0x2b   : > { %429 = vst.msk [vmem:[#allocation2 + $0x90] sm:$0xff] %vm409_vm0, %v403_v18  ;;  %430 = vst.msk [vmem:[#allocation2 + $0x98] sm:$0xff] %vm409_vm0, %v404_v19  ;;  %v408_v23 = vld [vmem:[%s2594_s9 + $0xb8] sm:$0x3]  ;;  %v451_v25 = vld [vmem:[#allocation2 + $0x10] sm:$0x3] }
  0x2c   : > { %v2649_v26 = vld [vmem:[#allocation2] sm:$0xff]  ;;  %432 = vst.msk [vmem:[#allocation2 + $0xa8] sm:$0xff] %vm409_vm0, %v406_v21  ;;  %433 = vst.msk [vmem:[#allocation2 + $0xb0] sm:$0xff] %vm409_vm0, %v407_v22  ;;  %v499_v27 = vrot.slane %v2647_v24, 1  ;;  %v501_v28 = vrot.slane %v451_v25, 1  ;;  %v2657_v31 = vld [vmem:[#allocation2 + $0x18] sm:$0xff] }
  0x2d   : > { %434 = vst.msk [vmem:[#allocation2 + $0xb8] sm:$0x3] %vm412_vm1, %v408_v23  ;;  %v498_v29 = vrot.slane %v2649_v26, 1  ;;  %v587_v30 = vrot.slane %v2649_v26, 2  ;;  %v2659_v32 = vld [vmem:[#allocation2 + $0x20] sm:$0xff]  ;;  %v588_v33 = vrot.slane %v2647_v24, 2 }
  0x2e   : > { %v759_v34 = vrot.slane %v2657_v31, 1  ;;  %v760_v35 = vrot.slane %v2659_v32, 1  ;;  %v713_v36 = vld [vmem:[#allocation2 + $0x28] sm:$0x3]  ;;  %v502_v37 = vsel %vm497_vm2, %v499_v27, %v501_v28  ;;  %v847_v39 = vrot.slane %v2657_v31, 2  ;;  %v2680_v48 = vld [vmem:[#allocation2 + $0x30] sm:$0xff] }
  0x2f   : > { %v500_v38 = vsel %vm497_vm2, %v498_v29, %v499_v27  ;;  %540 = vrot.lane.b32.xlu1 %v502_v37, %s2476_s14  ;;  %v589_v40 = vsel %vm586_vm3, %v587_v30, %v588_v33  ;;  %v848_v42 = vrot.slane %v2659_v32, 2  ;;  %v762_v43 = vrot.slane %v713_v36, 1  ;;  %v2682_v49 = vld [vmem:[#allocation2 + $0x38] sm:$0xff]  ;;  %v435_v50 = vld [vmem:[%s366_s8] sm:$0xff]  ;;  %v436_v51 = vld [vmem:[%s366_s8 + $0x8] sm:$0xff]  ;;  %s371_s9 = sadd.s32 1, %s2587_s17 }
  0x30   : > { %538 = vrot.lane.b32.xlu0 %v500_v38, %s2476_s14  ;;  %v761_v41 = vsel %vm497_vm2, %v759_v34, %v760_v35  ;;  %v850_v46 = vrot.slane %v713_v36, 2  ;;  %v590_v47 = vrot.slane %v451_v25, 2  ;;  %439 = vst.msk [vmem:[#allocation2 + $0xc0] sm:$0xff] %vm409_vm0, %v435_v50  ;;  %v764_v54 = vrot.slane %v2680_v48, 1  ;;  %440 = vst.msk [vmem:[#allocation2 + $0xc8] sm:$0xff] %vm409_vm0, %v436_v51  ;;  %v2717_v5 = vld [vmem:[#allocation2 + $0x48] sm:$0xff] }
  0x31   : > { %v849_v44 = vsel %vm586_vm3, %v847_v39, %v848_v42  ;;  %v763_v45 = vsel %vm497_vm2, %v760_v35, %v762_v43  ;;  %v2691_v55 = vrot.slane %v2682_v49, 1  ;;  %v437_v56 = vld [vmem:[%s366_s8 + $0x10] sm:$0x3]  ;;  %v454_v57 = vld [vmem:[#allocation2 + $0x28] sm:$0x3]  ;;  %v852_v62 = vrot.slane %v2680_v48, 2 }
  0x32   : > { %v851_v52 = vsel %vm586_vm3, %v848_v42, %v850_v46  ;;  %v591_v53 = vsel %vm586_vm3, %v588_v33, %v590_v47  ;;  %441 = vst.msk [vmem:[#allocation2 + $0xd0] sm:$0x3] %vm412_vm1, %v437_v56  ;;  %v506_v59 = vrot.slane %v454_v57, 1  ;;  %v716_v60 = vld [vmem:[#allocation2 + $0x40] sm:$0x3]  ;;  %v2707_v63 = vrot.slane %v2682_v49, 2 }
  0x33   : > { %627 = vrot.lane.b32.xlu1 %v589_v40, %s2477_s26  ;;  %v2699_v58 = vsel %vm497_vm2, %v764_v54, %v2691_v55  ;;  %v767_v0 = vrot.slane %v716_v60, 1  ;;  %v855_v3 = vrot.slane %v716_v60, 2  ;;  %v595_v4 = vrot.slane %v454_v57, 2  ;;  %v2035_v6 = vld [vmem:[%s3433_s3 + $0x10] sm:$0xff]  ;;  %v2036_v7 = vld [vmem:[%s3433_s3 + $0x18] sm:$0xf] }
  0x34   : > { %799 = vrot.lane.b32.xlu0 %v761_v41, %s2476_s14  ;;  %v507_v61 = vsel %vm497_vm2, %v760_v35, %v506_v59  ;;  %v2713_v1 = vsel %vm586_vm3, %v852_v62, %v2707_v63  ;;  %v2725_v8 = vld [vmem:[#allocation2 + $0x50] sm:$0xff]  ;;  %v708_v9 = vld [vmem:[%s3433_s3] sm:$0xff]  ;;  %v709_v10 = vld [vmem:[%s3433_s3 + $0x8] sm:$0xf]  ;;  %v769_v14 = vrot.slane %v2717_v5, 1  ;;  %v2249_v15 = vpack.c.bf16 %v2036_v7, %v2035_v6  ;;  %p374_p1 = scmp.lt.s32.totalorder %s371_s9, 17 }
  0x35   : > { %v768_v2 = vsel %vm497_vm2, %v2691_v55, %v767_v0  ;;  %v2733_v11 = vld [vmem:[#allocation2 + $0x68] sm:$0xff]  ;;  %v463_v13 = vld [vmem:[#allocation2 + $0x70] sm:$0x3]  ;;  %v856_v16 = vsel %vm586_vm3, %v2707_v63, %v855_v3  ;;  %v596_v17 = vsel %vm586_vm3, %v848_v42, %v595_v4  ;;  %v2747_v18 = vrot.slane %v2725_v8, 1  ;;  %v457_v19 = vld [vmem:[#allocation2 + $0x40] sm:$0x3] }
  0x36   : > { %v2749_v20 = vld [vmem:[#allocation2 + $0x80] sm:$0xff]  ;;  %v2751_v21 = vpack.c.bf16 %v709_v10, %v708_v9  ;;  %v466_v22 = vld [vmem:[#allocation2 + $0x88] sm:$0x3]  ;;  %v2754_v23 = vrot.slane %v2733_v11, 1  ;;  %2251 = vmatprep.subr.msk.bf16.mxu1 %vm2735_vm6, %v2249_v15  ;;  %v521_v25 = vrot.slane %v463_v13, 1  ;;  %v2759_v27 = vrot.slane %v2733_v11, 2 }
  0x37   : > { %887 = vrot.lane.b32.xlu1 %v849_v44, %s2477_s26  ;;  %2254 = vmatpush3.bf16.msk.msra.mxu1 %vm2735_vm6, %v2249_v15  ;;  %v610_v28 = vrot.slane %v463_v13, 2  ;;  %v511_v29 = vrot.slane %v457_v19, 1  ;;  %v2770_v30 = vrot.slane %v2749_v20, 1  ;;  %v526_v34 = vrot.slane %v466_v22, 1  ;;  %v719_v39 = vld [vmem:[#allocation2 + $0x58] sm:$0x3] }
  0x38   : > { %801 = vrot.lane.b32.xlu0 %v763_v45, %s2476_s14  ;;  %2257 = vmatprep.subr.msk.bf16.mxu0 %vm2735_vm6, %v2751_v21  ;;  %v2774_v33 = vsel %vm497_vm2, %v2754_v23, %v521_v25  ;;  %v2778_v35 = vsel %vm497_vm2, %v769_v14, %v2747_v18  ;;  %v2781_v36 = vrot.slane %v2749_v20, 2  ;;  %v615_v38 = vrot.slane %v466_v22, 2  ;;  %s3454_s9 = smov (!%p374_p1, %s371_s9), 17  ;;  %v469_v47 = vld [vmem:[#allocation2 + $0xa0] sm:$0x3]  ;;  %v2859_v15 = vld [vmem:[#allocation2 + $0xb0] sm:$0xff] }
  0x39   : > { %2260 = vmatpush3.bf16.msk.msra.mxu0 %vm2735_vm6, %v2751_v21  ;;  %v2788_v37 = vsel %vm586_vm3, %v2759_v27, %v610_v28  ;;  %2267 = vmatprep.subr.msk.bf16.mxu1 %vm2735_vm6, %v2751_v21  ;;  %v2795_v40 = vsel %vm497_vm2, %v2770_v30, %v526_v34  ;;  %s2304_s17 = smul.u32 3, %s3454_s9  ;;  %v512_v43 = vsel %vm497_vm2, %v2691_v55, %v511_v29  ;;  %v2811_v45 = vrot.slane %v2725_v8, 2  ;;  %v460_v3 = vld [vmem:[#allocation2 + $0x58] sm:$0x3]  ;;  %v722_v14 = vld [vmem:[#allocation2 + $0x70] sm:$0x3] }
  0x3a   : > { %v2801_v42 = vsel %vm586_vm3, %v2781_v36, %v615_v38  ;;  %v772_v46 = vrot.slane %v719_v39, 1  ;;  %v531_v51 = vrot.slane %v469_v47, 1  ;;  %v860_v56 = vrot.slane %v719_v39, 2  ;;  %v472_v22 = vld [vmem:[#allocation2 + $0xb8] sm:$0x3] }
  0x3b   : > { %889 = vrot.lane.b32.xlu1 %v851_v52, %s2477_s26  ;;  %s378_s10 = sadd.s32 %s2304_s17, %s2585_s15  ;;  %v600_v57 = vrot.slane %v457_v19, 2  ;;  %v620_v6 = vrot.slane %v469_v47, 2  ;;  %v516_v10 = vrot.slane %v460_v3, 1  ;;  %v777_v19 = vrot.slane %v722_v14, 1 }
  0x3c   : > { %629 = vrot.lane.b32.xlu0 %v591_v53, %s2477_s26  ;;  %s2034_s12 = sshll.u32 %s378_s10, 3  ;;  %v773_v54 = vsel %vm497_vm2, %v2747_v18, %v772_v46  ;;  %v861_v62 = vsel %vm586_vm3, %v2811_v45, %v860_v56  ;;  %v2869_v25 = vrot.slane %v2859_v15, 1  ;;  %v536_v28 = vrot.slane %v472_v22, 1 }
  0x3d   : > { %s380_s27 = scalar_lea.vmem %s3432_s2, %s2034_s12  ;;  %v601_v0 = vsel %vm586_vm3, %v2707_v63, %v600_v57  ;;  %v778_v38 = vsel %vm497_vm2, %v2754_v23, %v777_v19  ;;  %v865_v39 = vrot.slane %v722_v14, 2  ;;  %v2895_v56 = vrot.slane %v2859_v15, 2  ;;  %v2071_v57 = vld [vmem:[%s3433_s3 + $0x20] sm:$0xff]  ;;  %s2479_s12 = smov [#allocation3]  }
  0x3e   : > { %v442_v59 = vld [vmem:[%s380_s27] sm:$0xff]  ;;  %v443_v60 = vld [vmem:[%s380_s27 + $0x8] sm:$0xff]  ;;  %v444_v13 = vld [vmem:[%s380_s27 + $0x10] sm:$0x3]  ;;  %v2876_v29 = vsel %vm497_vm2, %v2869_v25, %v536_v28  ;;  %s2094_s27 = sshll.u32 %s2462_s22, 5 }
  0x3f   : > { %803 = vrot.lane.b32.xlu1 %v2699_v58, %s2476_s14  ;;  %446 = vst.msk [vmem:[#allocation2 + $0xd8] sm:$0xff] %vm409_vm0, %v442_v59  ;;  %447 = vst.msk [vmem:[#allocation2 + $0xe0] sm:$0xff] %vm409_vm0, %v443_v60  ;;  %v866_v46 = vsel %vm586_vm3, %v2759_v27, %v865_v39  ;;  %v2072_v59 = vld [vmem:[%s3433_s3 + $0x28] sm:$0xf]  ;;  %v625_v60 = vrot.slane %v472_v22, 2  ;;  %v2934_v22 = vld [vmem:[#allocation2 + $0x90] sm:$0xff]  ;;  %s1889_s15 = sadd.s32 %s2110_s16, %s2094_s27 }
  0x40   : > { %542 = vrot.lane.b32.xlu0 %v761_v41, %s2476_s14  ;;  %v2797_v41 = vld [vmem:[#allocation2 + $0x98] sm:$0xff]  ;;  %448 = vst.msk [vmem:[#allocation2 + $0xe8] sm:$0x3] %vm412_vm1, %v444_v13  ;;  %v784_v39 = vrot.slane %v2934_v22, 1  ;;  %s2095_s30 = sshll.u32 %s1889_s15, 7  ;;  %s2384_s16 = sshll.u32 %s2479_s12, 4  ;;  %s2385_s16 = int_to_ptr.vmem [resolvable:$false] %s2384_s16 }
  0x41   : > { %v2814_v50 = vrot.slane %v2797_v41, 1  ;;  %v2846_v4 = vrot.slane %v2797_v41, 2  ;;  %s3368_s10 = scalar_lea.hbm %s3435_s5, %s2095_s30  ;;  %s2386_s27 = scalar_lea.vmem %s2385_s16, 4096 }
  0x43   : > { %631 = vrot.lane.b32.xlu1 %v849_v44, %s2477_s26  ;;  %v857_v44 = vrot.slane %v2717_v5, 2  ;;  %v2822_v52 = vsel %vm497_vm2, %v2814_v50, %v531_v51  ;;  %v2852_v7 = vsel %vm586_vm3, %v2846_v4, %v620_v6 }
  0x44   : > { %544 = vrot.lane.b32.xlu0 %v507_v61, %s2476_s14  ;;  %v2833_v61 = vld [vmem:[#allocation2 + $0x60] sm:$0xff] }
  0x45   : > { %v2829_v53 = vsel %vm586_vm3, %v857_v44, %v2811_v45  ;;  %v2884_v44 = vld [vmem:[#allocation2 + $0x78] sm:$0xff] }
  0x46   : > { %v779_v51 = vrot.slane %v2884_v44, 1 }
  0x47   : > { %891 = vrot.lane.b32.xlu1 %v2713_v1, %s2477_s26 }
  0x48   : > { %805 = vrot.lane.b32.xlu0 %v768_v2, %s2476_s14  ;;  %v774_v2 = vrot.slane %v2833_v61, 1 }
  0x4a   : > { %v2856_v9 = vsel %vm497_vm2, %v774_v2, %v2754_v23  ;;  %v2913_v2 = vsel %vm497_vm2, %v779_v51, %v2770_v30 }
  0x4b   : > { %893 = vrot.lane.b32.xlu1 %v856_v16, %s2477_s26  ;;  %v517_v16 = vsel %vm497_vm2, %v2747_v18, %v516_v10  ;;  %v1367_v10 = vld [vmem:[#allocation2 + $0x40] sm:$0x3] }
  0x4c   : > { %633 = vrot.lane.b32.xlu0 %v596_v17, %s2477_s26  ;;  %v862_v17 = vrot.slane %v2833_v61, 2 }
  0x4e   : > { %v2880_v34 = vsel %vm586_vm3, %v862_v17, %v2759_v27 }
  0x4f   : > { %807 = vrot.lane.b32.xlu1 %v2778_v35, %s2476_s14 }
  0x50   : > { %546 = vrot.lane.b32.xlu0 %v2699_v58, %s2476_s14 }
  0x53   : > { %635 = vrot.lane.b32.xlu1 %v2713_v1, %s2477_s26 }
  0x54   : > { %548 = vrot.lane.b32.xlu0 %v512_v43, %s2476_s14  ;;  %v605_v43 = vrot.slane %v460_v3, 2  ;;  %v867_v3 = vrot.slane %v2884_v44, 2 }
  0x56   : > { %v606_v47 = vsel %vm586_vm3, %v2811_v45, %v605_v43  ;;  %v2925_v13 = vsel %vm586_vm3, %v867_v3, %v2781_v36  ;;  %v728_v43 = vld [vmem:[#allocation2 + $0xa0] sm:$0x3] }
  0x57   : > { %895 = vrot.lane.b32.xlu1 %v2829_v53, %s2477_s26 }
  0x58   : > { %809 = vrot.lane.b32.xlu0 %v773_v54, %s2476_s14  ;;  %v725_v54 = vld [vmem:[#allocation2 + $0x88] sm:$0x3] }
  0x59   : > { %v782_v6 = vrot.slane %v725_v54, 1  ;;  %v870_v19 = vrot.slane %v725_v54, 2 }
  0x5b   : > { %897 = vrot.lane.b32.xlu1 %v861_v62, %s2477_s26  ;;  %v2903_v62 = vpack.c.bf16 %v2072_v59, %v2071_v57  ;;  %v783_v14 = vsel %vm497_vm2, %v2770_v30, %v782_v6  ;;  %v875_v59 = vrot.slane %v728_v43, 2 }
  0x5c   : > { %637 = vrot.lane.b32.xlu0 %v601_v0, %s2477_s26  ;;  %v2909_v0 = vsel %vm586_vm3, %v2895_v56, %v625_v60  ;;  %v2966_v60 = vld [vmem:[#allocation2 + $0xa8] sm:$0xff] }
  0x5d   : > { %2263 = vmatprep.subr.msk.bf16.mxu0 %vm2735_vm6, %v2903_v62  ;;  %v876_v6 = vsel %vm586_vm3, %v2846_v4, %v875_v59 }
  0x5f   : > { %811 = vrot.lane.b32.xlu1 %v2856_v9, %s2476_s14 }
  0x60   : > { %550 = vrot.lane.b32.xlu0 %v2778_v35, %s2476_s14 }
  0x63   : > { %639 = vrot.lane.b32.xlu1 %v2829_v53, %s2477_s26 }
  0x64   : > { %552 = vrot.lane.b32.xlu0 %v517_v16, %s2476_s14  ;;  %v1416_v16 = vrot.slane %v1367_v10, 1 }
  0x66   : > { %v1417_v17 = vsel %vm497_vm2, %v2691_v55, %v1416_v16  ;;  %v2948_v55 = vsel %vm497_vm2, %v784_v39, %v2814_v50 }
  0x67   : > { %899 = vrot.lane.b32.xlu1 %v2880_v34, %s2477_s26 }
  0x68   : > { %813 = vrot.lane.b32.xlu0 %v778_v38, %s2476_s14  ;;  %v871_v38 = vsel %vm586_vm3, %v2781_v36, %v870_v19 }
  0x6b   : > { %901 = vrot.lane.b32.xlu1 %v866_v46, %s2477_s26  ;;  %v787_v46 = vrot.slane %v728_v43, 1  ;;  %v2998_v43 = vld [vmem:[#allocation2 + $0xc0] sm:$0xff] }
  0x6c   : > { %641 = vrot.lane.b32.xlu0 %v606_v47, %s2477_s26  ;;  %v1370_v47 = vld [vmem:[#allocation2 + $0x58] sm:$0x3] }
  0x6d   : > { %v788_v51 = vsel %vm497_vm2, %v2814_v50, %v787_v46  ;;  %v1421_v54 = vrot.slane %v1370_v47, 1 }
  0x6f   : > { %1453 = vrot.lane.b32.xlu1 %v2699_v58, %s2476_s14  ;;  %v1504_v58 = vrot.slane %v1367_v10, 2  ;;  %v1422_v57 = vsel %vm497_vm2, %v2747_v18, %v1421_v54  ;;  %v789_v10 = vrot.slane %v2966_v60, 1  ;;  %v734_v54 = vld [vmem:[#allocation2 + $0xd0] sm:$0x3] }
  0x70   : > { %815 = vrot.lane.b32.xlu0 %v2913_v2, %s2476_s14  ;;  %v797_v59 = vrot.slane %v734_v54, 1 }
  0x71   : > { %v1505_v28 = vsel %vm586_vm3, %v2707_v63, %v1504_v58  ;;  %v2980_v18 = vsel %vm497_vm2, %v789_v10, %v2869_v25 }
  0x73   : > { %903 = vrot.lane.b32.xlu1 %v2925_v13, %s2477_s26 }
  0x74   : > { %817 = vrot.lane.b32.xlu0 %v783_v14, %s2476_s14  ;;  %v731_v14 = vld [vmem:[#allocation2 + $0xb8] sm:$0x3] }
  0x75   : > { %v792_v16 = vrot.slane %v731_v14, 1  ;;  %v880_v39 = vrot.slane %v731_v14, 2 }
  0x77   : > { %1541 = vrot.lane.b32.xlu1 %v2713_v1, %s2477_s26  ;;  %v872_v1 = vrot.slane %v2934_v22, 2  ;;  %v793_v58 = vsel %vm497_vm2, %v2869_v25, %v792_v16 }
  0x78   : > { %1455 = vrot.lane.b32.xlu0 %v1417_v17, %s2476_s14  ;;  %v1373_v17 = vld [vmem:[#allocation2 + $0x70] sm:$0x3] }
  0x79   : > { %v2957_v63 = vsel %vm586_vm3, %v872_v1, %v2846_v4  ;;  %v1426_v19 = vrot.slane %v1373_v17, 1  ;;  %v3000_v1 = vld [vmem:[#allocation2 + $0xc8] sm:$0xff] }
  0x7b   : > { %1543 = vrot.lane.b32.xlu1 %v1505_v28, %s2477_s26  ;;  %v1427_v28 = vsel %vm497_vm2, %v2754_v23, %v1426_v19  ;;  %v3011_v23 = vrot.slane %v3000_v1, 1  ;;  %v885_v19 = vrot.slane %v734_v54, 2 }
  0x7c   : > { %905 = vrot.lane.b32.xlu0 %v871_v38, %s2477_s26  ;;  %v1514_v38 = vrot.slane %v1373_v17, 2 }
  0x7d   : > { %v798_v10 = vsel %vm497_vm2, %v3011_v23, %v797_v59 }
  0x7e   : > { %v1515_v46 = vsel %vm586_vm3, %v2759_v27, %v1514_v38  ;;  %v3021_v27 = vrot.slane %v3000_v1, 2 }
  0x7f   : > { %1457 = vrot.lane.b32.xlu1 %v2778_v35, %s2476_s14  ;;  %v1509_v35 = vrot.slane %v1370_v47, 2  ;;  %v881_v47 = vsel %vm586_vm3, %v2895_v56, %v880_v39 }
  0x80   : > { %819 = vrot.lane.b32.xlu0 %v2948_v55, %s2476_s14 }
  0x81   : > { %v1510_v3 = vsel %vm586_vm3, %v2811_v45, %v1509_v35  ;;  %v882_v35 = vrot.slane %v2998_v43, 2 }
  0x83   : > { %907 = vrot.lane.b32.xlu1 %v2957_v63, %s2477_s26 }
  0x84   : > { %821 = vrot.lane.b32.xlu0 %v788_v51, %s2476_s14  ;;  %v794_v51 = vrot.slane %v2998_v43, 1 }
  0x87   : > { %1545 = vrot.lane.b32.xlu1 %v2829_v53, %s2477_s26  ;;  %v877_v53 = vrot.slane %v2966_v60, 2 }
  0x88   : > { %1459 = vrot.lane.b32.xlu0 %v1422_v57, %s2476_s14  ;;  %v3017_v57 = vsel %vm497_vm2, %v794_v51, %v3011_v23 }
  0x89   : > { %v2989_v45 = vsel %vm586_vm3, %v877_v53, %v2895_v56 }
  0x8b   : > { %1547 = vrot.lane.b32.xlu1 %v1510_v3, %s2477_s26  ;;  %v1376_v3 = vld [vmem:[#allocation2 + $0x88] sm:$0x3] }
  0x8c   : > { %909 = vrot.lane.b32.xlu0 %v876_v6, %s2477_s26  ;;  %v3029_v6 = vsel %vm586_vm3, %v882_v35, %v3021_v27  ;;  %v1431_v14 = vrot.slane %v1376_v3, 1 }
  0x8e   : > { %v1432_v17 = vsel %vm497_vm2, %v2770_v30, %v1431_v14  ;;  %v1379_v14 = vld [vmem:[#allocation2 + $0xa0] sm:$0x3] }
  0x8f   : > { %1461 = vrot.lane.b32.xlu1 %v2856_v9, %s2476_s14 }
  0x90   : > { %823 = vrot.lane.b32.xlu0 %v2980_v18, %s2476_s14 }
  0x93   : > { %911 = vrot.lane.b32.xlu1 %v2989_v45, %s2477_s26 }
  0x94   : > { %825 = vrot.lane.b32.xlu0 %v793_v58, %s2476_s14  ;;  %v1519_v58 = vrot.slane %v1376_v3, 2 }
  0x96   : > { %v1520_v30 = vsel %vm586_vm3, %v2781_v36, %v1519_v58 }
  0x97   : > { %1549 = vrot.lane.b32.xlu1 %v2880_v34, %s2477_s26 }
  0x98   : > { %1463 = vrot.lane.b32.xlu0 %v1427_v28, %s2476_s14 }
  0x9b   : > { %1551 = vrot.lane.b32.xlu1 %v1515_v46, %s2477_s26 }
  0x9c   : > { %913 = vrot.lane.b32.xlu0 %v881_v47, %s2477_s26  ;;  %v886_v47 = vsel %vm586_vm3, %v3021_v27, %v885_v19  ;;  %v1524_v19 = vrot.slane %v1379_v14, 2 }
  0x9e   : > { %v1525_v12 = vsel %vm586_vm3, %v2846_v4, %v1524_v19 }
  0x9f   : > { %1465 = vrot.lane.b32.xlu1 %v2913_v2, %s2476_s14 }
  0xa0   : > { %827 = vrot.lane.b32.xlu0 %v3017_v57, %s2476_s14 }
  0xa1   : > { %v541_v53 = vpop.permute.xlu1 %540 }
  0xa2   : > { %v539_v16 = vpop.permute.xlu0 %538  ;;  %v676_v59 = vsel %vm409_vm0, %v2647_v24, %v541_v53  ;;  %v1436_v24 = vrot.slane %v1379_v14, 1 }
  0xa3   : > { %915 = vrot.lane.b32.xlu1 %v3029_v6, %s2477_s26  ;;  %v675_v28 = vsel %vm409_vm0, %v2649_v26, %v539_v16 }
  0xa4   : > { %829 = vrot.lane.b32.xlu0 %v798_v10, %s2476_s14 }
  0xa5   : > { %v628_v38 = vpop.permute.xlu1 %627 }
  0xa6   : > { %v800_v39 = vpop.permute.xlu0 %799  ;;  %v692_v46 = vsel %vm691_vm7, %v675_v28, %v628_v38 }
  0xa7   : > { %1553 = vrot.lane.b32.xlu1 %v2925_v13, %s2477_s26  ;;  %2197 = vmatprep.mubr.msk.f32.mxu0 %vm970_vm8, %v692_v46  ;;  %v935_v26 = vsel %vm409_vm0, %v2657_v31, %v800_v39 }
  0xa8   : > { %1467 = vrot.lane.b32.xlu0 %v1432_v17, %s2476_s14 }
  0xa9   : > { %v888_v51 = vpop.permute.xlu1 %887 }
  0xaa   : > { %v802_v54 = vpop.permute.xlu0 %801  ;;  %v951_v35 = vsel %vm691_vm7, %v935_v26, %v888_v51 }
  0xab   : > { %1555 = vrot.lane.b32.xlu1 %v1520_v30, %s2477_s26  ;;  %2169 = vmatprep.mubr.msk.f32.mxu1 %vm970_vm8, %v951_v35  ;;  %v936_v36 = vsel %vm409_vm0, %v2659_v32, %v802_v54 }
  0xac   : > { %917 = vrot.lane.b32.xlu0 %v886_v47, %s2477_s26  ;;  %v1382_v47 = vld [vmem:[#allocation2 + $0xb8] sm:$0x3] }
  0xad   : > { %v890_v3 = vpop.permute.xlu1 %889 }
  0xae   : > { %v630_v10 = vpop.permute.xlu0 %629  ;;  %v952_v16 = vsel %vm691_vm7, %v936_v36, %v890_v3 }
  0xaf   : > { %v693_v17 = vsel %vm691_vm7, %v676_v59, %v630_v10  ;;  %1469 = vrot.lane.b32.xlu1 %v2948_v55, %s2476_s14  ;;  %2170 = vmatmul.mubr.msk.f32.vlgmr.msra.gmra.mrb[0].mxu1 %vm970_vm8, %v952_v16  ;;  %v1529_v59 = vrot.slane %v1382_v47, 2 }
  0xb0   : > { %554 = vrot.lane.b32.xlu0 %v2856_v9, %s2476_s14  ;;  %2198 = vmatmul.mubr.msk.f32.vlgmr.msra.gmra.mrb[0].mxu0 %vm970_vm8, %v693_v17  ;;  %v1437_v9 = vsel %vm497_vm2, %v2814_v50, %v1436_v24 }
  0xb1   : > { %v804_v53 = vpop.permute.xlu1 %803  ;;  %2266 = vmatpush3.bf16.msk.msra.mxu0 %vm2735_vm6, %v2903_v62  ;;  %2268 = vmatpush3.bf16.msk.msra.mxu1 %vm2735_vm6, %v2751_v21 }
  0xb2   : > { %v543_v58 = vpop.permute.xlu0 %542  ;;  %v937_v21 = vsel %vm409_vm0, %v2680_v48, %v804_v53 }
  0xb3   : > { %643 = vrot.lane.b32.xlu1 %v2880_v34, %s2477_s26  ;;  %v677_v28 = vsel %vm409_vm0, %v2657_v31, %v543_v58  ;;  %v1385_v58 = vld [vmem:[#allocation2 + $0xd0] sm:$0x3] }
  0xb4   : > { %556 = vrot.lane.b32.xlu0 %v2774_v33, %s2476_s14 }
  0xb5   : > { %v632_v38 = vpop.permute.xlu1 %631 }
  0xb6   : > { %v545_v39 = vpop.permute.xlu0 %544  ;;  %v694_v62 = vsel %vm691_vm7, %v677_v28, %v632_v38 }
  0xb7   : > { %1557 = vrot.lane.b32.xlu1 %v2957_v63, %s2477_s26  ;;  %2200 = vmatprep.mubr.msk.f32.mxu0 %vm970_vm8, %v694_v62  ;;  %v678_v34 = vsel %vm409_vm0, %v2659_v32, %v545_v39  ;;  %v1441_v32 = vrot.slane %v1382_v47, 1 }
  0xb8   : > { %1471 = vrot.lane.b32.xlu0 %v1437_v9, %s2476_s14 }
  0xb9   : > { %v892_v33 = vpop.permute.xlu1 %891  ;;  %v1442_v35 = vsel %vm497_vm2, %v2869_v25, %v1441_v32 }
  0xba   : > { %v806_v50 = vpop.permute.xlu0 %805  ;;  %v953_v31 = vsel %vm691_vm7, %v937_v21, %v892_v33  ;;  %v3149_v21 = vld [vmem:[#allocation2 + $0xd8] sm:$0xff]  ;;  %v3151_v33 = vld [vmem:[#allocation2 + $0xe0] sm:$0xff] }
  0xbb   : > { %1559 = vrot.lane.b32.xlu1 %v1525_v12, %s2477_s26  ;;  %2172 = vmatprep.mubr.msk.f32.mxu1 %vm970_vm8, %v953_v31  ;;  %v938_v4 = vsel %vm409_vm0, %v2682_v49, %v806_v50 }
  0xbc   : > { %645 = vrot.lane.b32.xlu0 %v2788_v37, %s2477_s26 }
  0xbd   : > { %v894_v46 = vpop.permute.xlu1 %893 }
  0xbe   : > { %v634_v30 = vpop.permute.xlu0 %633  ;;  %v954_v26 = vsel %vm691_vm7, %v938_v4, %v894_v46 }
  0xbf   : > { %v695_v51 = vsel %vm691_vm7, %v678_v34, %v634_v30  ;;  %1473 = vrot.lane.b32.xlu1 %v2980_v18, %s2476_s14  ;;  %2173 = vmatmul.mubr.msk.f32.gmra.mrb[2].mxu1 %vm970_vm8, %v954_v26 }
  0xc0   : > { %558 = vrot.lane.b32.xlu0 %v2913_v2, %s2476_s14  ;;  %2201 = vmatmul.mubr.msk.f32.gmra.mrb[2].mxu0 %vm970_vm8, %v695_v51  ;;  %v1388_v51 = vld [vmem:[#allocation2 + $0xe8] sm:$0x3] }
  0xc1   : > { %v808_v37 = vpop.permute.xlu1 %807 }
  0xc2   : > { %v547_v54 = vpop.permute.xlu0 %546  ;;  %v939_v25 = vsel %vm409_vm0, %v2717_v5, %v808_v37 }
  0xc3   : > { %647 = vrot.lane.b32.xlu1 %v2925_v13, %s2477_s26  ;;  %v679_v2 = vsel %vm409_vm0, %v2680_v48, %v547_v54  ;;  %v1537_v54 = vrot.slane %v3151_v33, 2 }
  0xc4   : > { %560 = vrot.lane.b32.xlu0 %v2795_v40, %s2476_s14  ;;  %v1530_v40 = vsel %vm586_vm3, %v2895_v56, %v1529_v59 }
  0xc5   : > { %v636_v36 = vpop.permute.xlu1 %635 }
  0xc6   : > { %v549_v3 = vpop.permute.xlu0 %548  ;;  %v696_v10 = vsel %vm691_vm7, %v679_v2, %v636_v36 }
  0xc7   : > { %1561 = vrot.lane.b32.xlu1 %v2989_v45, %s2477_s26  ;;  %2203 = vmatprep.mubr.msk.f32.mxu0 %vm970_vm8, %v696_v10  ;;  %v680_v17 = vsel %vm409_vm0, %v2682_v49, %v549_v3  ;;  %v1539_v3 = vrot.slane %v1388_v51, 2 }
  0xc8   : > { %1475 = vrot.lane.b32.xlu0 %v1442_v35, %s2476_s14  ;;  %v1451_v35 = vrot.slane %v1388_v51, 1 }
  0xc9   : > { %v896_v13 = vpop.permute.xlu1 %895 }
  0xca   : > { %v810_v14 = vpop.permute.xlu0 %809  ;;  %v955_v16 = vsel %vm691_vm7, %v939_v25, %v896_v13 }
  0xcb   : > { %1563 = vrot.lane.b32.xlu1 %v1530_v40, %s2477_s26  ;;  %2175 = vmatprep.mubr.msk.f32.mxu1 %vm970_vm8, %v955_v16  ;;  %v940_v56 = vsel %vm409_vm0, %v2725_v8, %v810_v14 }
  0xcc   : > { %649 = vrot.lane.b32.xlu0 %v2801_v42, %s2477_s26  ;;  %v1446_v42 = vrot.slane %v1385_v58, 1 }
  0xcd   : > { %v898_v24 = vpop.permute.xlu1 %897 }
  0xce   : > { %v638_v53 = vpop.permute.xlu0 %637  ;;  %v956_v9 = vsel %vm691_vm7, %v940_v56, %v898_v24  ;;  %v1447_v39 = vsel %vm497_vm2, %v3011_v23, %v1446_v42  ;;  %v1449_v23 = vrot.slane %v3151_v33, 1 }
  0xcf   : > { %v697_v19 = vsel %vm691_vm7, %v680_v17, %v638_v53  ;;  %1477 = vrot.lane.b32.xlu1 %v3017_v57, %s2476_s14  ;;  %2176 = vmatmul.mubr.msk.f32.gmra.mrb[4].mxu1 %vm970_vm8, %v956_v9  ;;  %v1534_v57 = vrot.slane %v1385_v58, 2 }
  0xd0   : > { %562 = vrot.lane.b32.xlu0 %v2948_v55, %s2476_s14  ;;  %2204 = vmatmul.mubr.msk.f32.gmra.mrb[4].mxu0 %vm970_vm8, %v697_v19 }
  0xd1   : > { %v812_v28 = vpop.permute.xlu1 %811 }
  0xd2   : > { %v551_v38 = vpop.permute.xlu0 %550  ;;  %v941_v31 = vsel %vm409_vm0, %v2833_v61, %v812_v28 }
  0xd3   : > { %651 = vrot.lane.b32.xlu1 %v2957_v63, %s2477_s26  ;;  %v681_v55 = vsel %vm409_vm0, %v2717_v5, %v551_v38  ;;  %v1448_v63 = vrot.slane %v3149_v21, 1 }
  0xd4   : > { %564 = vrot.lane.b32.xlu0 %v2822_v52, %s2476_s14  ;;  %v1535_v52 = vsel %vm586_vm3, %v3021_v27, %v1534_v57 }
  0xd5   : > { %v640_v62 = vpop.permute.xlu1 %639  ;;  %v1450_v27 = vsel %vm497_vm2, %v1448_v63, %v1449_v23 }
  0xd6   : > { %v553_v12 = vpop.permute.xlu0 %552  ;;  %v698_v50 = vsel %vm691_vm7, %v681_v55, %v640_v62 }
  0xd7   : > { %1565 = vrot.lane.b32.xlu1 %v3029_v6, %s2477_s26  ;;  %2206 = vmatprep.mubr.msk.f32.mxu0 %vm970_vm8, %v698_v50  ;;  %v682_v6 = vsel %vm409_vm0, %v2725_v8, %v553_v12 }
  0xd8   : > { %1479 = vrot.lane.b32.xlu0 %v1447_v39, %s2476_s14 }
  0xd9   : > { %v900_v34 = vpop.permute.xlu1 %899 }
  0xda   : > { %v814_v4 = vpop.permute.xlu0 %813  ;;  %v957_v46 = vsel %vm691_vm7, %v941_v31, %v900_v34 }
  0xdb   : > { %1567 = vrot.lane.b32.xlu1 %v1535_v52, %s2477_s26  ;;  %2178 = vmatprep.mubr.msk.f32.mxu1 %vm970_vm8, %v957_v46  ;;  %v942_v30 = vsel %vm409_vm0, %v2733_v11, %v814_v4 }
  0xdc   : > { %653 = vrot.lane.b32.xlu0 %v2852_v7, %s2477_s26  ;;  %v1536_v7 = vrot.slane %v3149_v21, 2 }
  0xdd   : > { %v902_v47 = vpop.permute.xlu1 %901 }
  0xde   : > { %v642_v26 = vpop.permute.xlu0 %641  ;;  %v958_v32 = vsel %vm691_vm7, %v942_v30, %v902_v47  ;;  %v1538_v36 = vsel %vm586_vm3, %v1536_v7, %v1537_v54 }
  0xdf   : > { %v699_v37 = vsel %vm691_vm7, %v682_v6, %v642_v26  ;;  %1481 = vrot.lane.b32.xlu1 %v1450_v27, %s2476_s14  ;;  %2179 = vmatmul.mubr.msk.f32.gmra.mrb[6].mxu1 %vm970_vm8, %v958_v32 }
  0xe0   : > { %566 = vrot.lane.b32.xlu0 %v2980_v18, %s2476_s14  ;;  %2207 = vmatmul.mubr.msk.f32.gmra.mrb[6].mxu0 %vm970_vm8, %v699_v37  ;;  %v1452_v18 = vsel %vm497_vm2, %v1449_v23, %v1451_v35 }
  0xe1   : > { %v1454_v59 = vpop.permute.xlu1 %1453 }
  0xe2   : > { %v816_v2 = vpop.permute.xlu0 %815 }
  0xe3   : > { %655 = vrot.lane.b32.xlu1 %v2989_v45, %s2477_s26  ;;  %v943_v10 = vsel %vm409_vm0, %v2884_v44, %v816_v2  ;;  %v1589_v45 = vsel %vm409_vm0, %v2680_v48, %v1454_v59 }
  0xe4   : > { %568 = vrot.lane.b32.xlu0 %v2876_v29, %s2476_s14  ;;  %v1540_v29 = vsel %vm586_vm3, %v1537_v54, %v1539_v3 }
  0xe5   : > { %v904_v40 = vpop.permute.xlu1 %903 }
  0xe6   : > { %v818_v25 = vpop.permute.xlu0 %817  ;;  %v959_v13 = vsel %vm691_vm7, %v943_v10, %v904_v40 }
  0xe7   : > { %1569 = vrot.lane.b32.xlu1 %v1538_v36, %s2477_s26  ;;  %2181 = vmatprep.mubr.msk.f32.mxu1 %vm970_vm8, %v959_v13  ;;  %v944_v56 = vsel %vm409_vm0, %v2749_v20, %v818_v25 }
  0xe8   : > { %1483 = vrot.lane.b32.xlu0 %v1452_v18, %s2476_s14  ;;  %s332_s14 = sand.u32 1, %s2450_s19  }
  0xe9   : > { %v1542_v14 = vpop.permute.xlu1 %1541  ;;  %s2028_s17 = sshll.u32 %s332_s14, 7  ;;  %s3377_s21 = scalar_lea.sflag [#allocation4], %s332_s14 }
  0xea   : > { %v1456_v16 = vpop.permute.xlu0 %1455  ;;  %v1605_v17 = vsel %vm691_vm7, %v1589_v45, %v1542_v14  ;;  %s3333_s13 = scalar_lea.vmem [#allocation3], %s2028_s17 }
  0xeb   : > { %1571 = vrot.lane.b32.xlu1 %v1540_v29, %s2477_s26  ;;  %2225 = vmatprep.mubr.msk.f32.mxu0 %vm970_vm8, %v1605_v17  ;;  %v1590_v24 = vsel %vm409_vm0, %v2682_v49, %v1456_v16  ;;  %s1892_s8 = sshll.u32 %s3333_s13, 4  ;;  %s3371_s8 = int_to_ptr.vmem [resolvable:$true] %s1892_s8 }
  0xec   : > { %657 = vrot.lane.b32.xlu0 %v2909_v0, %s2477_s26  ;;  %s2380_s22 = scalar_lea.vmem %s3371_s8, 2048  ;;  %p2387_p6 = scmp.lt.s32.totalorder %s3371_s8, %s2385_s16 }
  0xed   : > { %v1544_v53 = vpop.permute.xlu1 %1543  ;;  %p2381_p2 = scmp.ne.s32.totalorder %s3371_s8, %s2380_s22  ;;  %p2388_p7 = scmp.lt.s32.totalorder %s2386_s27, %s2380_s22 }
  0xee   : > { %v906_v58 = vpop.permute.xlu0 %905  ;;  %v1606_v48 = vsel %vm691_vm7, %v1590_v24, %v1544_v53 }
  0xef   : > { %v960_v9 = vsel %vm691_vm7, %v944_v56, %v906_v58  ;;  %2226 = vmatmul.mubr.msk.f32.vlgmr.msra.gmra.mrb[0].mxu0 %vm970_vm8, %v1606_v48  ;;  %p2382_p4 = pnand %p2381_p2, %p2562_p3  ;;  %p2389_p9 = por %p2388_p7, %p2387_p6 }
  0xf0   : > { %2182 = vmatmul.mubr.msk.f32.gmra.mrb[8].mxu1 %vm970_vm8, %v960_v9 }
  0xf1   : > { %v1458_v19 = vpop.permute.xlu1 %1457  ;;  %p2383_p5 = pneg %p2382_p4 }
  0xf2   : > { %v820_v0 = vpop.permute.xlu0 %819  ;;  %v1591_v49 = vsel %vm409_vm0, %v2717_v5, %v1458_v19 }
  0xf3   : > { %v945_v42 = vsel %vm409_vm0, %v2934_v22, %v820_v0  ;;  %p2390_p10 = pnand %p2389_p9, %p2383_p5 }
  0xf5   : > { %v908_v28 = vpop.permute.xlu1 %907 }
  0xf6   : > { %v822_v38 = vpop.permute.xlu0 %821  ;;  %v961_v39 = vsel %vm691_vm7, %v945_v42, %v908_v28 }
  0xf7   : > { %2184 = vmatprep.mubr.msk.f32.mxu1 %vm970_vm8, %v961_v39  ;;  %v946_v12 = vsel %vm409_vm0, %v2797_v41, %v822_v38 }
  0xf9   : > { %v1546_v57 = vpop.permute.xlu1 %1545 }
  0xfa   : > { %v1460_v55 = vpop.permute.xlu0 %1459  ;;  %v1607_v62 = vsel %vm691_vm7, %v1591_v49, %v1546_v57 }
  0xfb   : > { %2228 = vmatprep.mubr.msk.f32.mxu0 %vm970_vm8, %v1607_v62  ;;  %v1592_v50 = vsel %vm409_vm0, %v2725_v8, %v1460_v55 }
  0xfd   : > { %v1548_v52 = vpop.permute.xlu1 %1547 }
  0xfe   : > { %v910_v63 = vpop.permute.xlu0 %909  ;;  %v1608_v23 = vsel %vm691_vm7, %v1592_v50, %v1548_v52 }
  0xff   : > { %v962_v31 = vsel %vm691_vm7, %v946_v12, %v910_v63  ;;  %2229 = vmatmul.mubr.msk.f32.gmra.mrb[2].mxu0 %vm970_vm8, %v1608_v23 }
 0x100   : > { %2185 = vmatmul.mubr.msk.f32.gmra.mrb[10].mxu1 %vm970_vm8, %v962_v31 }
 0x101   : > { %v1462_v5 = vpop.permute.xlu1 %1461 }
 0x102   : > { %v824_v34 = vpop.permute.xlu0 %823  ;;  %v1593_v8 = vsel %vm409_vm0, %v2833_v61, %v1462_v5 }
 0x103   : > { %v947_v4 = vsel %vm409_vm0, %v2966_v60, %v824_v34 }
 0x105   : > { %v912_v46 = vpop.permute.xlu1 %911 }
 0x106   : > { %v826_v27 = vpop.permute.xlu0 %825  ;;  %v963_v6 = vsel %vm691_vm7, %v947_v4, %v912_v46 }
 0x107   : > { %2187 = vmatprep.mubr.msk.f32.mxu1 %vm970_vm8, %v963_v6  ;;  %v948_v51 = vsel %vm409_vm0, %v2859_v15, %v826_v27 }
 0x109   : > { %v1550_v30 = vpop.permute.xlu1 %1549 }
 0x10a   : > { %v1464_v47 = vpop.permute.xlu0 %1463  ;;  %v1609_v26 = vsel %vm691_vm7, %v1593_v8, %v1550_v30 }
 0x10b   : > { %2231 = vmatprep.mubr.msk.f32.mxu0 %vm970_vm8, %v1609_v26  ;;  %v1594_v32 = vsel %vm409_vm0, %v2733_v11, %v1464_v47 }
 0x10d   : > { %v1552_v37 = vpop.permute.xlu1 %1551 }
 0x10e   : > { %v914_v7 = vpop.permute.xlu0 %913  ;;  %v1610_v54 = vsel %vm691_vm7, %v1594_v32, %v1552_v37 }
 0x10f   : > { %v964_v35 = vsel %vm691_vm7, %v948_v51, %v914_v7  ;;  %2232 = vmatmul.mubr.msk.f32.gmra.mrb[4].mxu0 %vm970_vm8, %v1610_v54 }
 0x110   : > { %2188 = vmatmul.mubr.msk.f32.gmra.mrb[12].mxu1 %vm970_vm8, %v964_v35 }
 0x111   : > { %v1466_v59 = vpop.permute.xlu1 %1465 }
 0x112   : > { %v828_v2 = vpop.permute.xlu0 %827  ;;  %v1595_v40 = vsel %vm409_vm0, %v2884_v44, %v1466_v59 }
 0x113   : > { %v949_v36 = vsel %vm409_vm0, %v2998_v43, %v828_v2 }
 0x115   : > { %v916_v18 = vpop.permute.xlu1 %915 }
 0x116   : > { %v830_v3 = vpop.permute.xlu0 %829  ;;  %v965_v10 = vsel %vm691_vm7, %v949_v36, %v916_v18 }
 0x117   : > { %2190 = vmatprep.mubr.msk.f32.mxu1 %vm970_vm8, %v965_v10  ;;  %v950_v45 = vsel %vm409_vm0, %v3000_v1, %v830_v3 }
 0x119   : > { %v1554_v25 = vpop.permute.xlu1 %1553 }
 0x11a   : > { %v1468_v13 = vpop.permute.xlu0 %1467  ;;  %v1611_v29 = vsel %vm691_vm7, %v1595_v40, %v1554_v25 }
 0x11b   : > { %2234 = vmatprep.mubr.msk.f32.mxu0 %vm970_vm8, %v1611_v29  ;;  %v1596_v14 = vsel %vm409_vm0, %v2749_v20, %v1468_v13 }
 0x11d   : > { %v1556_v16 = vpop.permute.xlu1 %1555 }
 0x11e   : > { %v918_v17 = vpop.permute.xlu0 %917  ;;  %v1612_v56 = vsel %vm691_vm7, %v1596_v14, %v1556_v16 }
 0x11f   : > { %v966_v24 = vsel %vm691_vm7, %v950_v45, %v918_v17  ;;  %2235 = vmatmul.mubr.msk.f32.gmra.mrb[6].mxu0 %vm970_vm8, %v1612_v56 }
 0x120   : > { %2191 = vmatmul.mubr.msk.f32.gmra.mrb[14].mxu1 %vm970_vm8, %v966_v24 }
 0x121   : > { %v1470_v53 = vpop.permute.xlu1 %1469 }
 0x122   : > { %v555_v58 = vpop.permute.xlu0 %554  ;;  %v1597_v42 = vsel %vm409_vm0, %v2934_v22, %v1470_v53 }
 0x123   : > { %v683_v48 = vsel %vm409_vm0, %v2833_v61, %v555_v58 }
 0x125   : > { %v644_v9 = vpop.permute.xlu1 %643 }
 0x126   : > { %v557_v19 = vpop.permute.xlu0 %556  ;;  %v700_v0 = vsel %vm691_vm7, %v683_v48, %v644_v9 }
 0x127   : > { %2209 = vmatprep.mubr.msk.f32.mxu1 %vm970_vm8, %v700_v0  ;;  %v684_v49 = vsel %vm409_vm0, %v2733_v11, %v557_v19 }
 0x129   : > { %v1558_v28 = vpop.permute.xlu1 %1557 }
 0x12a   : > { %v1472_v38 = vpop.permute.xlu0 %1471  ;;  %v1613_v39 = vsel %vm691_vm7, %v1597_v42, %v1558_v28 }
 0x12b   : > { %2237 = vmatprep.mubr.msk.f32.mxu0 %vm970_vm8, %v1613_v39  ;;  %v1598_v61 = vsel %vm409_vm0, %v2797_v41, %v1472_v38  ;;  %v3329_v39 = vld [vmem:[%s3434_s4] ss:$0 sm:$0xff] }
 0x12d   : > { %v1560_v57 = vpop.permute.xlu1 %1559 }
 0x12e   : > { %v646_v55 = vpop.permute.xlu0 %645  ;;  %v1614_v62 = vsel %vm691_vm7, %v1598_v61, %v1560_v57 }
 0x12f   : > { %v701_v12 = vsel %vm691_vm7, %v684_v49, %v646_v55  ;;  %2238 = vmatmul.mubr.msk.f32.gmra.mrb[8].mxu0 %vm970_vm8, %v1614_v62 }
 0x130   : > { %2210 = vmatmul.mubr.msk.f32.vlgmr.msra.gmra.mrb[8].mxu1 %vm970_vm8, %v701_v12 }
 0x131   : > { %v1474_v50 = vpop.permute.xlu1 %1473 }
 0x132   : > { %v559_v52 = vpop.permute.xlu0 %558  ;;  %v1599_v5 = vsel %vm409_vm0, %v2966_v60, %v1474_v50 }
 0x133   : > { %v685_v63 = vsel %vm409_vm0, %v2884_v44, %v559_v52 }
 0x135   : > { %v648_v23 = vpop.permute.xlu1 %647 }
 0x136   : > { %v561_v11 = vpop.permute.xlu0 %560  ;;  %v702_v31 = vsel %vm691_vm7, %v685_v63, %v648_v23 }
 0x137   : > { %2212 = vmatprep.mubr.msk.f32.mxu1 %vm970_vm8, %v702_v31  ;;  %v686_v27 = vsel %vm409_vm0, %v2749_v20, %v561_v11 }
 0x139   : > { %v1562_v34 = vpop.permute.xlu1 %1561 }
 0x13a   : > { %v1476_v4 = vpop.permute.xlu0 %1475  ;;  %v1615_v46 = vsel %vm691_vm7, %v1599_v5, %v1562_v34 }
 0x13b   : > { %2240 = vmatprep.mubr.msk.f32.mxu0 %vm970_vm8, %v1615_v46  ;;  %v1600_v44 = vsel %vm409_vm0, %v2859_v15, %v1476_v4 }
 0x13d   : > { %v1564_v6 = vpop.permute.xlu1 %1563 }
 0x13e   : > { %v650_v8 = vpop.permute.xlu0 %649  ;;  %v1616_v30 = vsel %vm691_vm7, %v1600_v44, %v1564_v6 }
 0x13f   : > { %v703_v47 = vsel %vm691_vm7, %v686_v27, %v650_v8  ;;  %2241 = vmatmul.mubr.msk.f32.gmra.mrb[10].mxu0 %vm970_vm8, %v1616_v30 }
 0x140   : > { %2213 = vmatmul.mubr.msk.f32.gmra.mrb[10].mxu1 %vm970_vm8, %v703_v47 }
 0x141   : > { %v1478_v26 = vpop.permute.xlu1 %1477 }
 0x142   : > { %v563_v51 = vpop.permute.xlu0 %562  ;;  %v1601_v54 = vsel %vm409_vm0, %v2998_v43, %v1478_v26 }
 0x143   : > { %v687_v32 = vsel %vm409_vm0, %v2934_v22, %v563_v51 }
 0x145   : > { %v652_v37 = vpop.permute.xlu1 %651 }
 0x146   : > { %v565_v20 = vpop.permute.xlu0 %564  ;;  %v704_v7 = vsel %vm691_vm7, %v687_v32, %v652_v37 }
 0x147   : > { %2215 = vmatprep.mubr.msk.f32.mxu1 %vm970_vm8, %v704_v7  ;;  %v688_v36 = vsel %vm409_vm0, %v2797_v41, %v565_v20 }
 0x149   : > { %v1566_v35 = vpop.permute.xlu1 %1565 }
 0x14a   : > { %v1480_v59 = vpop.permute.xlu0 %1479  ;;  %v1617_v2 = vsel %vm691_vm7, %v1601_v54, %v1566_v35 }
 0x14b   : > { %2243 = vmatprep.mubr.msk.f32.mxu0 %vm970_vm8, %v1617_v2  ;;  %v1602_v22 = vsel %vm409_vm0, %v3000_v1, %v1480_v59 }
 0x14d   : > { %v1568_v18 = vpop.permute.xlu1 %1567 }
 0x14e   : > { %v654_v3 = vpop.permute.xlu0 %653  ;;  %v1618_v10 = vsel %vm691_vm7, %v1602_v22, %v1568_v18 }
 0x14f   : > { %v705_v40 = vsel %vm691_vm7, %v688_v36, %v654_v3  ;;  %2244 = vmatmul.mubr.msk.f32.gmra.mrb[12].mxu0 %vm970_vm8, %v1618_v10 }
 0x150   : > { %2216 = vmatmul.mubr.msk.f32.gmra.mrb[12].mxu1 %vm970_vm8, %v705_v40 }
 0x151   : > { %v1482_v43 = vpop.permute.xlu1 %1481 }
 0x152   : > { %v567_v25 = vpop.permute.xlu0 %566  ;;  %v1603_v1 = vsel %vm409_vm0, %v3149_v21, %v1482_v43 }
 0x153   : > { %v689_v13 = vsel %vm409_vm0, %v2966_v60, %v567_v25 }
 0x155   : > { %v656_v29 = vpop.permute.xlu1 %655 }
 0x156   : > { %v569_v41 = vpop.permute.xlu0 %568  ;;  %v706_v45 = vsel %vm691_vm7, %v689_v13, %v656_v29 }
 0x157   : > { %2218 = vmatprep.mubr.msk.f32.mxu1 %vm970_vm8, %v706_v45  ;;  %v690_v56 = vsel %vm409_vm0, %v2859_v15, %v569_v41 }
 0x159   : > { %v1570_v14 = vpop.permute.xlu1 %1569 }
 0x15a   : > { %v1484_v16 = vpop.permute.xlu0 %1483  ;;  %v1619_v17 = vsel %vm691_vm7, %v1603_v1, %v1570_v14 }
 0x15b   : > { %2246 = vmatprep.mubr.msk.f32.mxu0 %vm970_vm8, %v1619_v17  ;;  %v1604_v60 = vsel %vm409_vm0, %v3151_v33, %v1484_v16 }
 0x15d   : > { %v1572_v24 = vpop.permute.xlu1 %1571 }
 0x15e   : > { %v658_v53 = vpop.permute.xlu0 %657  ;;  %v1620_v58 = vsel %vm691_vm7, %v1604_v60, %v1572_v24 }
 0x15f   : > { %v707_v21 = vsel %vm691_vm7, %v690_v56, %v658_v53  ;;  %2247 = vmatmul.mubr.msk.f32.gmra.mrb[14].mxu0 %vm970_vm8, %v1620_v58 }
 0x160   : > { %2219 = vmatmul.mubr.msk.f32.gmra.mrb[14].mxu1 %vm970_vm8, %v707_v21 }
 0x182   : > { %v2171_v48 = vpop.f32.mrb[0].mxu1 }
 0x183   : > { %v1089_v9 = vpop.f32.mrb[1].mxu1 }
 0x192   : > { %v2174_v19 = vpop.f32.mrb[2].mxu1 }
 0x193   : > { %v1099_v0 = vpop.f32.mrb[3].mxu1 }
 0x1a2   : > { %v2177_v15 = vpop.f32.mrb[4].mxu1 }
 0x1a3   : > { %v1109_v42 = vpop.f32.mrb[5].mxu1 }
 0x1b2   : > { %v2180_v28 = vpop.f32.mrb[6].mxu1 }
 0x1b3   : > { %v1119_v38 = vpop.f32.mrb[7].mxu1 }
 0x1c2   : > { %v2227_v33 = vpop.f32.mrb[0].mxu0 }
 0x1c3   : > { %v2269_v49 = vadd.f32 %v2227_v33, %v2171_v48  ;;  %v1741_v61 = vpop.f32.mrb[1].mxu0 }
 0x1c4   : > { %v2270_v57 = vadd.f32 %v1741_v61, %v1089_v9 }
 0x1c5   : > { %v1844_v55 = vadd.f32 %v2269_v49, %v3329_v39 }
 0x1c6   : > { %v1843_v62 = vadd.f32 %v2270_v57, %v3329_v39 }
 0x1c7   : > { %1860 = vst [vmem:[%s3333_s13 + $0x8] sm:$0xff] %v1844_v55 }
 0x1c8   : > { %1859 = vst [vmem:[%s3333_s13] sm:$0xff] %v1843_v62 }
 0x1d2   : > { %v2230_v12 = vpop.f32.mrb[2].mxu0 }
 0x1d3   : > { %v2271_v50 = vadd.f32 %v2230_v12, %v2174_v19  ;;  %v1751_v52 = vpop.f32.mrb[3].mxu0 }
 0x1d4   : > { %v2272_v63 = vadd.f32 %v1751_v52, %v1099_v0 }
 0x1d5   : > { %v1846_v23 = vadd.f32 %v2271_v50, %v3329_v39 }
 0x1d6   : > { %v1845_v11 = vadd.f32 %v2272_v63, %v3329_v39 }
 0x1d7   : > { %1862 = vst [vmem:[%s3333_s13 + $0x18] sm:$0xff] %v1846_v23 }
 0x1d8   : > { %1861 = vst [vmem:[%s3333_s13 + $0x10] sm:$0xff] %v1845_v11 }
 0x1e2   : > { %v2233_v31 = vpop.f32.mrb[4].mxu0 }
 0x1e3   : > { %v2273_v5 = vadd.f32 %v2233_v31, %v2177_v15  ;;  %v1761_v34 = vpop.f32.mrb[5].mxu0 }
 0x1e4   : > { %v2274_v4 = vadd.f32 %v1761_v34, %v1109_v42 }
 0x1e5   : > { %v1848_v46 = vadd.f32 %v2273_v5, %v3329_v39 }
 0x1e6   : > { %v1847_v27 = vadd.f32 %v2274_v4, %v3329_v39 }
 0x1e7   : > { %1864 = vst [vmem:[%s3333_s13 + $0x28] sm:$0xff] %v1848_v46 }
 0x1e8   : > { %1863 = vst [vmem:[%s3333_s13 + $0x20] sm:$0xff] %v1847_v27 }
 0x1f2   : > { %v2236_v44 = vpop.f32.mrb[6].mxu0 }
 0x1f3   : > { %v2275_v6 = vadd.f32 %v2236_v44, %v2180_v28  ;;  %v1771_v8 = vpop.f32.mrb[7].mxu0 }
 0x1f4   : > { %v2276_v30 = vadd.f32 %v1771_v8, %v1119_v38 }
 0x1f5   : > { %v1850_v47 = vadd.f32 %v2275_v6, %v3329_v39 }
 0x1f6   : > { %v1849_v26 = vadd.f32 %v2276_v30, %v3329_v39 }
 0x1f7   : > { %1866 = vst [vmem:[%s3333_s13 + $0x38] sm:$0xff] %v1850_v47 }
 0x1f8   : > { %1865 = vst [vmem:[%s3333_s13 + $0x30] sm:$0xff] %v1849_v26 }
 0x202   : > { %v2239_v32 = vpop.f32.mrb[8].mxu0 }
 0x203   : > { %v2211_v51 = vpop.f32.mrb[8].mxu1  ;;  %v1781_v7 = vpop.f32.mrb[9].mxu0 }
 0x204   : > { %v2277_v37 = vadd.f32 %v2239_v32, %v2211_v51  ;;  %v1325_v20 = vpop.f32.mrb[9].mxu1 }
 0x205   : > { %v2278_v54 = vadd.f32 %v1781_v7, %v1325_v20 }
 0x206   : > { %v1852_v35 = vadd.f32 %v2277_v37, %v3329_v39 }
 0x207   : > { %v1851_v59 = vadd.f32 %v2278_v54, %v3329_v39 }
 0x208   : > { %1868 = vst [vmem:[%s3333_s13 + $0x48] sm:$0xff] %v1852_v35 }
 0x209   : > { %1867 = vst [vmem:[%s3333_s13 + $0x40] sm:$0xff] %v1851_v59 }
 0x212   : > { %v2242_v36 = vpop.f32.mrb[10].mxu0 }
 0x213   : > { %v2214_v2 = vpop.f32.mrb[10].mxu1  ;;  %v1791_v3 = vpop.f32.mrb[11].mxu0 }
 0x214   : > { %v2279_v22 = vadd.f32 %v2242_v36, %v2214_v2  ;;  %v1335_v18 = vpop.f32.mrb[11].mxu1 }
 0x215   : > { %v2280_v10 = vadd.f32 %v1791_v3, %v1335_v18 }
 0x216   : > { %v1854_v40 = vadd.f32 %v2279_v22, %v3329_v39 }
 0x217   : > { %v1853_v43 = vadd.f32 %v2280_v10, %v3329_v39 }
 0x218   : > { %1870 = vst [vmem:[%s3333_s13 + $0x58] sm:$0xff] %v1854_v40 }
 0x219   : > { %1869 = vst [vmem:[%s3333_s13 + $0x50] sm:$0xff] %v1853_v43 }
 0x222   : > { %v2245_v13 = vpop.f32.mrb[12].mxu0 }
 0x223   : > { %v2217_v25 = vpop.f32.mrb[12].mxu1  ;;  %v1801_v45 = vpop.f32.mrb[13].mxu0 }
 0x224   : > { %v2281_v29 = vadd.f32 %v2245_v13, %v2217_v25  ;;  %v1345_v41 = vpop.f32.mrb[13].mxu1 }
 0x225   : > { %v2282_v1 = vadd.f32 %v1801_v45, %v1345_v41 }
 0x226   : > { %v1856_v14 = vadd.f32 %v2281_v29, %v3329_v39 }
 0x227   : > { %v1855_v16 = vadd.f32 %v2282_v1, %v3329_v39 }
 0x228   : > { %1872 = vst [vmem:[%s3333_s13 + $0x68] sm:$0xff] %v1856_v14 }
 0x229   : > { %1871 = vst [vmem:[%s3333_s13 + $0x60] sm:$0xff] %v1855_v16 }
 0x232   : > { %v2248_v56 = vpop.f32.mrb[14].mxu0 }
 0x233   : > { %v2220_v17 = vpop.f32.mrb[14].mxu1  ;;  %v1811_v53 = vpop.f32.mrb[15].mxu0 }
 0x234   : > { %v2283_v60 = vadd.f32 %v2248_v56, %v2220_v17  ;;  %v1355_v24 = vpop.f32.mrb[15].mxu1 }
 0x235   : > { %v2284_v58 = vadd.f32 %v1811_v53, %v1355_v24 }
 0x236   : > { %v1858_v21 = vadd.f32 %v2283_v60, %v3329_v39 }
 0x237   : > { %v1857_v48 = vadd.f32 %v2284_v58, %v3329_v39 }
 0x238   : > { %1874 = vst [vmem:[%s3333_s13 + $0x78] sm:$0xff] %v1858_v21 }
 0x239   : > { %1873 = vst [vmem:[%s3333_s13 + $0x70] sm:$0xff] %v1857_v48 }
 0x23a   : > { %2393 = shalt.err (!%p2390_p10)
}
 0x23b   : > { %s2394_s14 = scalar_lea.hbm %s3368_s10, 2048  ;;  %s2398_s30 = scalar_lea.hbm %s3435_s5, 8192 }
 0x23c   : > { %p2395_p11 = scmp.ne.s32.totalorder %s3368_s10, %s2394_s14  ;;  %p2399_p0 = scmp.lt.u32.totalorder %s3368_s10, %s3435_s5 }
 0x23d   : > { %p2400_p1 = scmp.lt.u32.totalorder %s2398_s30, %s2394_s14  ;;  %p2402_p4 = scmp.lt.u32.totalorder %s2394_s14, %s3368_s10 }
 0x23e   : > { %p2396_p12 = pnand %p2395_p11, %p2562_p3 }
 0x23f   : > { %p2401_p2 = por %p2400_p1, %p2399_p0 }
 0x240   : > { %p2397_p13 = pneg %p2396_p12 }
 0x241   : > { %p2403_p5 = por %p2402_p4, %p2401_p2 }
 0x243   : > { %p2404_p6 = pnand %p2403_p5, %p2397_p13 }
 0x245   : > { %2407 = shalt.err (!%p2404_p6)
}
 0x246   : > { %s2480_s22 = smov 128  }
 0x247   : > { %2305 = dma.vmem_to_hbm [thread:$0]  (%p2562_p3), %s3371_s8, 2048, %s3368_s10, %s3377_s21, %s2480_s22, %s2480_s22, %s2477_s26  }
 0x248 PF: > { %p2311_p7 = scmp.ge.s32.totalorder %s2474_s25, 2  ;;  %s1907_s12 = sand.u32 1, %s2446_s18  }
 0x249   : > { %s1908_s16 = scalar_lea.sflag [#allocation4], %s1907_s12 }
 0x24a   : > { %p2308_p9 = pnand %p2311_p7, %p2571_p8 }
 0x24c   : > { %2441 = dma.done.wait (!%p2308_p9), %s1908_s16, 2048  }
 0x24d   : > { %2443 = vsyncadd (!%p2308_p9), %s1908_s16, 4294965248  ;;  %s18_s25 = sadd.s32 1, %s2474_s25   ;;  %s3440_s18 = smov %s2450_s19 }
 0x24e   : > { %p15_p10 = scmp.ge.s32.totalorder %s18_s25, 6   ;;  %s3441_s19 = smov %s2454_s20 }
 0x24f   : > { %s3442_s20 = smov %s2580_s11  ;;  %s3443_s21 = smov %s2466_s23 }
 0x250   : > { %s3444_s22 = smov %s2470_s24  ;;  %s3445_s23 = smov %s3448_s28 }
 0x251   : > { %s3446_s24 = smov %s3452_s29  ;;  %17 = sbr.rel (!%p15_p10) target bundleno = 5 (0x5), region = 87 }
 0x258   :  { %1913 = vsyncpa [#allocation4], 1 }
 0x259   :  { %1915 = vsyncpa [#allocation4 + $0x1], 1 }

</bundles_post_ra>
